<compile_context>
chip_gen: v7x
topology: tpu7x:2x2x1
jax: 0.10.0
libtpu: 0.0.40
codegen_flags: <defaults>
</compile_context>

<pallas_src>
import functools

import jax
import jax.numpy as jnp
from jax import lax
from jax.experimental import pallas as pl
from jax.experimental.pallas import tpu as pltpu


def _poly_conv_kernel(x_ref, w0_ref, w1_ref, w2_ref, b_ref, o_ref, *,
                      rows_per_batch: int, compute_dtype, precision):
    """Polyphase strided-conv block.

    x_ref : (M, f*D)  grouped input rows (input dtype; cast to compute dtype here)
    w0_ref: (f*D, D)  taps 0..f-1     (previous group row)
    w1_ref: (f*D, D)  taps f..2f-1    (current group row)
    w2_ref: (D,   D)  tap 2f          (first frame of the next group row)
    b_ref : (1, D)    bias (f32)
    o_ref : (M, D)    output rows
    """
    xg = x_ref[...].astype(compute_dtype)            # f32 -> bf16 cast on the VMEM block
    m = xg.shape[0]
    d_out = o_ref.shape[-1]
    d_in = w2_ref.shape[0]

    # Row phase inside its sequence; blocks hold whole sequences, so boundary rows
    # are exactly r == 0 / r == rows_per_batch - 1.
    r = lax.broadcasted_iota(jnp.int32, (m, 1), 0) % rows_per_batch

    acc = jnp.broadcast_to(b_ref[...], (m, d_out)).astype(jnp.float32)

    # Current group row: full f*D contraction.
    acc = acc + jnp.dot(xg, w1_ref[...], precision=precision,
                        preferred_element_type=jnp.float32)

    # Previous group row: compute on unshifted rows, rotate the (M, D) f32 partial
    # DOWN by one row through the XLU, zero the first row of every sequence.
    y_prev = jnp.dot(xg, w0_ref[...], precision=precision,
                     preferred_element_type=jnp.float32)
    y_prev = pltpu.roll(y_prev, shift=1, axis=0)
    acc = acc + jnp.where(r == 0, 0.0, y_prev)

    # Tap 2f: only the first D lanes of the next group row contribute -> (M, D) x (D, D).
    # (For small D this could alternatively be folded into w1 as an (f+1)*D contraction.)
    y_next = jnp.dot(xg[:, :d_in], w2_ref[...], precision=precision,
                     preferred_element_type=jnp.float32)
    y_next = pltpu.roll(y_next, shift=m - 1, axis=0)  # rotate UP by one row
    acc = acc + jnp.where(r == rows_per_batch - 1, 0.0, y_next)

    o_ref[...] = acc.astype(o_ref.dtype)


def _pick_block_batch(B, T_out, per_batch_bytes, fixed_bytes, budget_bytes,
                      prefer_align):
    """Largest batch-group per grid step that fits the working-set budget, keeps the
    grouped-row block sublane aligned (16 preferred for bf16 packing), and — when
    possible — leaves >= 2 grid steps for pipelining / megacore sharding."""
    divisors = [d for d in range(1, B + 1) if B % d == 0]

    def aligned(bb, a):
        return (bb * T_out) % a == 0 or bb == B       # full-array blocks are exempt

    def fits(bb):
        return fixed_bytes + bb * per_batch_bytes <= budget_bytes

    if B > 1:
        passes = [(True, prefer_align), (True, 8), (False, prefer_align), (False, 8)]
    else:
        passes = [(False, prefer_align), (False, 8)]
    for need_steps, align in passes:
        for bb in sorted(divisors, reverse=True):
            if need_steps and B // bb < 2:
                continue
            if aligned(bb, align) and fits(bb):
                return bb
    # Nothing fits the budget: smallest aligned block; the caller raises vmem_limit
    # to cover whatever was selected (previous version could silently exceed it).
    for bb in sorted(divisors):
        if aligned(bb, 8):
            return bb
    return B


def downsampling_pixel_conv(xs, weight, bias, factor: int, *,
                            matmul_dtype=jnp.bfloat16, precision=None,
                            out_dtype=None, block_batch=None):
    """xs: (B, T, D); weight: (D_out, D_in, K) (PyTorch Conv1d layout); bias: (D_out,).

    Returns (B, T_out, D_out) with T_out = ceil(T / factor).

    Default: bf16 MXU operands with f32 accumulation (native path on v5e/v6e/v7x).
    For a bit-faithful f32 conv pass matmul_dtype=jnp.float32 and
    precision=lax.Precision.HIGHEST.  `out_dtype` lets consumers take bf16 output.
    """
    if factor == 1:
        return xs                                     # nn.Identity branch

    B, T, D = xs.shape
    f = int(factor)
    K = 2 * f + 1
    assert weight.shape == (D, D, K), weight.shape
    T_out = (T - 1) // f + 1                          # == ceil(T / f)
    fD = f * D
    x_dtype = jnp.dtype(xs.dtype)
    compute_dtype = jnp.dtype(matmul_dtype) if matmul_dtype is not None else x_dtype
    out_dtype = jnp.dtype(out_dtype) if out_dtype is not None else x_dtype

    # ---- group input rows: (B, T, D) -> (B*T_out, f*D).  Free view when T % f == 0.
    # TODO(synk): mask the T % factor tail in-kernel to avoid this HBM pad copy.
    tail = T_out * f - T
    xg = xs if tail == 0 else jnp.pad(xs, ((0, 0), (0, tail), (0, 0)))
    xg = xg.reshape(B * T_out, fD)                    # dtype cast happens in-kernel

    # ---- polyphase weight blocks from (D_out, D_in, K).
    wt = jnp.transpose(weight, (2, 1, 0))             # (K, D_in, D_out)
    w0 = wt[0:f].reshape(fD, D).astype(compute_dtype)       # taps 0..f-1
    w1 = wt[f:2 * f].reshape(fD, D).astype(compute_dtype)   # taps f..2f-1
    w2 = wt[2 * f].astype(compute_dtype)                    # tap 2f, (D, D) — no zero rows
    b2 = bias.reshape(1, D).astype(jnp.float32)

    # ---- generation-aware VMEM sizing.
    try:
        vmem_cap = int(pltpu.get_tpu_info().vmem_capacity_bytes)
    except Exception:
        vmem_cap = 64 * 1024 * 1024                   # assume the smallest (v7x per-TC)
    vmem_cap = max(vmem_cap, 64 * 1024 * 1024)
    budget = (vmem_cap * 5) // 8                      # working-set target per step
    vmem_soft_cap = (vmem_cap * 3) // 4               # never claim the whole VMEM

    in_blk = T_out * fD * x_dtype.itemsize            # pipelined input block / sequence
    out_blk = T_out * D * out_dtype.itemsize          # pipelined output block / sequence
    tmp_blk = T_out * fD * compute_dtype.itemsize + 4 * T_out * D * 4  # cast + f32 partials
    per_batch = 2 * (in_blk + out_blk) + tmp_blk      # double-buffered I/O + temporaries
    weight_bytes = (2 * fD * D + D * D) * compute_dtype.itemsize + D * 4
    fixed = 2 * weight_bytes                          # conservative (double-buffered)

    prefer_align = 16 if compute_dtype == jnp.bfloat16 else 8
    if block_batch is None:
        bb = _pick_block_batch(B, T_out, per_batch, fixed, budget, prefer_align)
    else:
        bb = int(block_batch)
        assert B % bb == 0
    nb = B // bb
    M = bb * T_out

    est = fixed + bb * per_batch
    vmem_limit = int(min(vmem_soft_cap, max(32 * 1024 * 1024, 2 * est)))

    kernel = functools.partial(_poly_conv_kernel, rows_per_batch=T_out,
                               compute_dtype=compute_dtype, precision=precision)

    def _call(single_buffer_weights):
        wkw = {"pipeline_mode": pl.Buffered(1)} if single_buffer_weights else {}
        grid_spec = pltpu.PrefetchScalarGridSpec(
            num_scalar_prefetch=0,
            grid=(nb,),
            in_specs=[
                pl.BlockSpec((M, fD), lambda i: (i, 0)),          # grouped x rows
                pl.BlockSpec((fD, D), lambda i: (0, 0), **wkw),   # W taps 0..f-1
                pl.BlockSpec((fD, D), lambda i: (0, 0), **wkw),   # W taps f..2f-1
                pl.BlockSpec((D, D), lambda i: (0, 0), **wkw),    # W tap 2f
                pl.BlockSpec((1, D), lambda i: (0, 0), **wkw),    # bias
            ],
            out_specs=pl.BlockSpec((M, D), lambda i: (i, 0)),
        )
        return pl.pallas_call(
            kernel,
            out_shape=jax.ShapeDtypeStruct((B * T_out, D), out_dtype),
            grid_spec=grid_spec,
            compiler_params=pltpu.CompilerParams(
                dimension_semantics=("parallel",),
                vmem_limit_bytes=vmem_limit,
            ),
        )(xg, w0, w1, w2, b2)

    try:
        out2 = _call(True)     # constant blocks single-buffered (reclaims VMEM on v7x)
    except Exception:
        out2 = _call(False)    # this jax version rejects Buffered(1): default buffering
    return out2.reshape(B, T_out, D)


def downsampling_pixel_forward(xs, x_lens, attn_masks, conv_masks,
                               weight, bias, factor: int, *,
                               matmul_dtype=jnp.bfloat16, precision=None,
                               out_dtype=None):
    """Full DownsamplingPixel.forward (mask/length bookkeeping is trivial JAX glue)."""
    ys = downsampling_pixel_conv(xs, weight, bias, factor, matmul_dtype=matmul_dtype,
                                 precision=precision, out_dtype=out_dtype)
    new_lens = ((x_lens - 1) // factor + 1).astype(jnp.int32)   # torch .long analog
    new_attn = attn_masks[:, ::factor, ::factor]
    new_conv = conv_masks[:, ::factor]
    return ys, new_lens, new_attn, new_conv


def _reference_conv(xs, weight, bias, factor, precision=None):
    """Pure-JAX reference matching torch.nn.Conv1d on (B, D, T) input."""
    x_ncw = jnp.transpose(xs, (0, 2, 1))                        # (B, D, T)
    y = lax.conv_general_dilated(
        x_ncw, weight,
        window_strides=(factor,),
        padding=[(factor, factor)],
        dimension_numbers=("NCH", "OIH", "NCH"),
        precision=precision,
    ) + bias[None, :, None]
    return jnp.transpose(y, (0, 2, 1))                          # (B, T_out, D)


if __name__ == "__main__":
    def run_case(B, T, D, factor, key, matmul_dtype=jnp.bfloat16, precision=None,
                 atol=5e-2, rtol=5e-2):
        K = 2 * factor + 1
        kx, kw, kb = jax.random.split(key, 3)
        xs = jax.random.normal(kx, (B, T, D), jnp.float32)
        bound = 1.0 / (D * K) ** 0.5
        weight = jax.random.uniform(kw, (D, D, K), jnp.float32, -bound, bound)
        bias = jax.random.uniform(kb, (D,), jnp.float32, -bound, bound)
        ys = downsampling_pixel_conv(xs, weight, bias, factor,
                                     matmul_dtype=matmul_dtype, precision=precision)
        jax.block_until_ready(ys)
        ys_ref = _reference_conv(xs, weight, bias, factor,
                                 precision=lax.Precision.HIGHEST)
        T_out = (T - 1) // factor + 1
        assert ys.shape == (B, T_out, D), ys.shape
        err = float(jnp.max(jnp.abs(ys - ys_ref)))
        assert jnp.allclose(ys, ys_ref, atol=atol, rtol=rtol), err
        return ys

    key = jax.random.PRNGKey(0)
    k1, k2, k3, k4 = jax.random.split(key, 4)

    # Exact f32 path, factor=2 (T divisible by factor; 2-step grid).
    run_case(2, 16, 32, 2, k1, matmul_dtype=jnp.float32,
             precision=lax.Precision.HIGHEST, atol=1e-4, rtol=1e-4)
    # Exact f32 path, factor=3, T NOT divisible by factor (tail-pad grouping).
    run_case(2, 16, 32, 3, k2, matmul_dtype=jnp.float32,
             precision=lax.Precision.HIGHEST, atol=1e-4, rtol=1e-4)
    # Exact f32 path, factor=4 (fD = 128 lanes; exercises the (D, D) tap-2f matmul).
    run_case(2, 32, 32, 4, k4, matmul_dtype=jnp.float32,
             precision=lax.Precision.HIGHEST, atol=1e-4, rtol=1e-4)
    # Default bf16-operand MXU path (f32 accumulation), looser tolerance.
    run_case(2, 16, 32, 2, k1, atol=5e-2, rtol=5e-2)

    # Full forward (conv + lengths + masks), default bf16 path.
    B, T, D, factor = 2, 16, 32, 2
    K = 2 * factor + 1
    kx, kw, kb = jax.random.split(k3, 3)
    xs = jax.random.normal(kx, (B, T, D), jnp.float32)
    bound = 1.0 / (D * K) ** 0.5
    weight = jax.random.uniform(kw, (D, D, K), jnp.float32, -bound, bound)
    bias = jax.random.uniform(kb, (D,), jnp.float32, -bound, bound)
    x_lens = jnp.array([16, 12], dtype=jnp.int32)
    t_idx = jnp.arange(T)
    conv_masks = t_idx[None, :] < x_lens[:, None]                   # (B, T)
    attn_masks = conv_masks[:, :, None] & conv_masks[:, None, :]    # (B, T, T)

    ys, new_lens, new_attn, new_conv = downsampling_pixel_forward(
        xs, x_lens, attn_masks, conv_masks, weight, bias, factor)
    jax.block_until_ready((ys, new_lens, new_attn, new_conv))

    T_out = (T - 1) // factor + 1
    assert ys.shape == (B, T_out, D), ys.shape
    assert new_lens.tolist() == [(16 - 1) // factor + 1, (12 - 1) // factor + 1]
    assert new_attn.shape == (B, (T + factor - 1) // factor, (T + factor - 1) // factor)
    assert new_conv.shape == (B, (T + factor - 1) // factor)

    # Identity branch (factor == 1).
    ys1, l1, a1, c1 = downsampling_pixel_forward(
        xs, x_lens, attn_masks, conv_masks, weight, bias, 1)
    assert ys1.shape == xs.shape and bool(jnp.all(ys1 == xs))
    assert l1.tolist() == x_lens.tolist()

    print("KERNEL_OK")
</pallas_src>

<mosaic_0001>
module attributes {stable_mosaic.version = 11 : i64} {
  func.func @_poly_conv_kernel(%arg0: i32, %arg1: memref<8x64xf32, #tpu.memory_space<vmem>>, %arg2: memref<64x32xf32, #tpu.memory_space<vmem>>, %arg3: memref<64x32xf32, #tpu.memory_space<vmem>>, %arg4: memref<32x32xf32, #tpu.memory_space<vmem>>, %arg5: memref<1x32xf32, #tpu.memory_space<vmem>>, %arg6: memref<8x32xf32, #tpu.memory_space<vmem>>) attributes {dimension_semantics = [#tpu.dimension_semantics<parallel>], iteration_bounds = array<i64: 2>, scalar_prefetch = 0 : i64, scratch_operands = 0 : i64, tpu.core_type = #tpu.core_type<tc>, window_params = [{transform_indices = @transform_0, window_bounds = array<i64: 8, 64>}, {pipeline_mode = #tpu.pipeline_mode<synchronous>, transform_indices = @transform_1, window_bounds = array<i64: 64, 32>}, {pipeline_mode = #tpu.pipeline_mode<synchronous>, transform_indices = @transform_2, window_bounds = array<i64: 64, 32>}, {pipeline_mode = #tpu.pipeline_mode<synchronous>, transform_indices = @transform_3, window_bounds = array<i64: 32, 32>}, {pipeline_mode = #tpu.pipeline_mode<synchronous>, transform_indices = @transform_4, window_bounds = array<i64: 1, 32>}, {transform_indices = @transform_5, window_bounds = array<i64: 8, 32>}]} {
    %c0 = arith.constant 0 : index
    %c0_0 = arith.constant 0 : index
    %0 = vector.load %arg1[%c0, %c0_0] : memref<8x64xf32, #tpu.memory_space<vmem>>, vector<8x64xf32>
    %1 = tpu.iota {dimensions = array<i32: 0>} : vector<8x1xi32>
    %c8_i32 = arith.constant 8 : i32
    %c0_i32 = arith.constant 0 : i32
    %2 = arith.cmpi eq, %c8_i32, %c0_i32 : i32
    %c1_i32 = arith.constant 1 : i32
    %3 = arith.select %2, %c1_i32, %c8_i32 : i32
    %4 = vector.broadcast %3 : i32 to vector<8x1xi32>
    %5 = arith.remsi %1, %4 : vector<8x1xi32>
    %c0_i32_1 = arith.constant 0 : i32
    %6 = vector.broadcast %c0_i32_1 : i32 to vector<8x1xi32>
    %7 = arith.cmpi ne, %5, %6 : vector<8x1xi32>
    %c0_i32_2 = arith.constant 0 : i32
    %8 = vector.broadcast %c0_i32_2 : i32 to vector<8x1xi32>
    %9 = arith.cmpi slt, %5, %8 : vector<8x1xi32>
    %c0_i32_3 = arith.constant 0 : i32
    %10 = arith.cmpi slt, %3, %c0_i32_3 : i32
    %11 = vector.broadcast %10 : i1 to vector<8x1xi1>
    %12 = vector.broadcast %11 : vector<8x1xi1> to vector<8x1xi1>
    %13 = arith.xori %9, %12 : vector<8x1xi1>
    %14 = arith.andi %13, %7 : vector<8x1xi1>
    %15 = vector.broadcast %3 : i32 to vector<8x1xi32>
    %16 = arith.addi %5, %15 : vector<8x1xi32>
    %17 = arith.select %14, %16, %5 : vector<8x1xi1>, vector<8x1xi32>
    %c0_4 = arith.constant 0 : index
    %c0_5 = arith.constant 0 : index
    %18 = vector.load %arg5[%c0_4, %c0_5] : memref<1x32xf32, #tpu.memory_space<vmem>>, vector<1x32xf32>
    %19 = vector.shape_cast %18 : vector<1x32xf32> to vector<1x32xf32>
    %20 = vector.broadcast %19 : vector<1x32xf32> to vector<8x32xf32>
    %c0_6 = arith.constant 0 : index
    %c0_7 = arith.constant 0 : index
    %21 = vector.load %arg3[%c0_6, %c0_7] : memref<64x32xf32, #tpu.memory_space<vmem>>, vector<64x32xf32>
    %cst = arith.constant dense<0.000000e+00> : vector<8x32xf32>
    %22 = tpu.matmul %0, %21, %cst {dimension_numbers = #tpu.dot_dimension_numbers<[1], [0], [0], [1], [0, 0, 1, 1], [], []>, precision = #tpu.contract_precision<fp32>} : vector<8x64xf32>, vector<64x32xf32>, vector<8x32xf32> -> vector<8x32xf32>
    %23 = arith.addf %20, %22 : vector<8x32xf32>
    %c0_8 = arith.constant 0 : index
    %c0_9 = arith.constant 0 : index
    %24 = vector.load %arg2[%c0_8, %c0_9] : memref<64x32xf32, #tpu.memory_space<vmem>>, vector<64x32xf32>
    %cst_10 = arith.constant dense<0.000000e+00> : vector<8x32xf32>
    %25 = tpu.matmul %0, %24, %cst_10 {dimension_numbers = #tpu.dot_dimension_numbers<[1], [0], [0], [1], [0, 0, 1, 1], [], []>, precision = #tpu.contract_precision<fp32>} : vector<8x64xf32>, vector<64x32xf32>, vector<8x32xf32> -> vector<8x32xf32>
    %c1_i32_11 = arith.constant 1 : i32
    %26 = tpu.dynamic_rotate %25 by %c1_i32_11 dim 0 : vector<8x32xf32>, i32 -> vector<8x32xf32>
    %c0_i32_12 = arith.constant 0 : i32
    %27 = vector.broadcast %c0_i32_12 : i32 to vector<8x1xi32>
    %28 = arith.cmpi eq, %17, %27 : vector<8x1xi32>
    %cst_13 = arith.constant 0.000000e+00 : f32
    %29 = vector.shape_cast %28 : vector<8x1xi1> to vector<8x1xi1>
    %30 = vector.broadcast %29 : vector<8x1xi1> to vector<8x32xi1>
    %31 = vector.broadcast %cst_13 : f32 to vector<8x32xf32>
    %32 = arith.select %30, %31, %26 : vector<8x32xi1>, vector<8x32xf32>
    %33 = arith.addf %23, %32 : vector<8x32xf32>
    %34 = vector.extract_strided_slice %0 {offsets = [0, 0], sizes = [8, 32], strides = [1, 1]} : vector<8x64xf32> to vector<8x32xf32>
    %c0_14 = arith.constant 0 : index
    %c0_15 = arith.constant 0 : index
    %35 = vector.load %arg4[%c0_14, %c0_15] : memref<32x32xf32, #tpu.memory_space<vmem>>, vector<32x32xf32>
    %cst_16 = arith.constant dense<0.000000e+00> : vector<8x32xf32>
    %36 = tpu.matmul %34, %35, %cst_16 {dimension_numbers = #tpu.dot_dimension_numbers<[1], [0], [0], [1], [0, 0, 1, 1], [], []>, precision = #tpu.contract_precision<fp32>} : vector<8x32xf32>, vector<32x32xf32>, vector<8x32xf32> -> vector<8x32xf32>
    %c7_i32 = arith.constant 7 : i32
    %37 = tpu.dynamic_rotate %36 by %c7_i32 dim 0 : vector<8x32xf32>, i32 -> vector<8x32xf32>
    %c7_i32_17 = arith.constant 7 : i32
    %38 = vector.broadcast %c7_i32_17 : i32 to vector<8x1xi32>
    %39 = arith.cmpi eq, %17, %38 : vector<8x1xi32>
    %cst_18 = arith.constant 0.000000e+00 : f32
    %40 = vector.shape_cast %39 : vector<8x1xi1> to vector<8x1xi1>
    %41 = vector.broadcast %40 : vector<8x1xi1> to vector<8x32xi1>
    %42 = vector.broadcast %cst_18 : f32 to vector<8x32xf32>
    %43 = arith.select %41, %42, %37 : vector<8x32xi1>, vector<8x32xf32>
    %44 = arith.addf %33, %43 : vector<8x32xf32>
    %c0_19 = arith.constant 0 : index
    %c0_20 = arith.constant 0 : index
    %45 = vector.load %arg6[%c0_19, %c0_20] : memref<8x32xf32, #tpu.memory_space<vmem>>, vector<8x32xf32>
    tpu.vector_store %arg6[%c0_19, %c0_20], %44 {strides = array<i32>} : memref<8x32xf32, #tpu.memory_space<vmem>>, vector<8x32xf32>,
    return
  }
  func.func @transform_0(%arg0: i32) -> (i32, i32) {
    %c0_i32 = arith.constant 0 : i32
    %c0_i32_0 = arith.constant 0 : i32
    return %arg0, %c0_i32 : i32, i32
  }
  func.func @transform_1(%arg0: i32) -> (i32, i32) {
    %c0_i32 = arith.constant 0 : i32
    %c0_i32_0 = arith.constant 0 : i32
    %c0_i32_1 = arith.constant 0 : i32
    return %c0_i32, %c0_i32_0 : i32, i32
  }
  func.func @transform_2(%arg0: i32) -> (i32, i32) {
    %c0_i32 = arith.constant 0 : i32
    %c0_i32_0 = arith.constant 0 : i32
    %c0_i32_1 = arith.constant 0 : i32
    return %c0_i32, %c0_i32_0 : i32, i32
  }
  func.func @transform_3(%arg0: i32) -> (i32, i32) {
    %c0_i32 = arith.constant 0 : i32
    %c0_i32_0 = arith.constant 0 : i32
    %c0_i32_1 = arith.constant 0 : i32
    return %c0_i32, %c0_i32_0 : i32, i32
  }
  func.func @transform_4(%arg0: i32) -> (i32, i32) {
    %c0_i32 = arith.constant 0 : i32
    %c0_i32_0 = arith.constant 0 : i32
    %c0_i32_1 = arith.constant 0 : i32
    return %c0_i32, %c0_i32_0 : i32, i32
  }
  func.func @transform_5(%arg0: i32) -> (i32, i32) {
    %c0_i32 = arith.constant 0 : i32
    %c0_i32_0 = arith.constant 0 : i32
    return %arg0, %c0_i32 : i32, i32
  }
}

module attributes {stable_mosaic.version = 11 : i64} {
  func.func @_poly_conv_kernel(%arg0: i32, %arg1: memref<8x64xf32, #tpu.memory_space<vmem>>, %arg2: memref<64x32xf32, #tpu.memory_space<vmem>>, %arg3: memref<64x32xf32, #tpu.memory_space<vmem>>, %arg4: memref<32x32xf32, #tpu.memory_space<vmem>>, %arg5: memref<1x32xf32, #tpu.memory_space<vmem>>, %arg6: memref<8x32xf32, #tpu.memory_space<vmem>>) attributes {dimension_semantics = [#tpu.dimension_semantics<parallel>], iteration_bounds = array<i64: 2>, scalar_prefetch = 0 : i64, scratch_operands = 0 : i64, tpu.core_type = #tpu.core_type<tc>, window_params = [{transform_indices = @transform_0, window_bounds = array<i64: 8, 64>}, {pipeline_mode = #tpu.pipeline_mode<synchronous>, transform_indices = @transform_1, window_bounds = array<i64: 64, 32>}, {pipeline_mode = #tpu.pipeline_mode<synchronous>, transform_indices = @transform_2, window_bounds = array<i64: 64, 32>}, {pipeline_mode = #tpu.pipeline_mode<synchronous>, transform_indices = @transform_3, window_bounds = array<i64: 32, 32>}, {pipeline_mode = #tpu.pipeline_mode<synchronous>, transform_indices = @transform_4, window_bounds = array<i64: 1, 32>}, {transform_indices = @transform_5, window_bounds = array<i64: 8, 32>}]} {
    %c0 = arith.constant 0 : index
    %c0_0 = arith.constant 0 : index
    %0 = vector.load %arg1[%c0, %c0_0] : memref<8x64xf32, #tpu.memory_space<vmem>>, vector<8x64xf32>
    %1 = tpu.iota {dimensions = array<i32: 0>} : vector<8x1xi32>
    %c8_i32 = arith.constant 8 : i32
    %c0_i32 = arith.constant 0 : i32
    %2 = arith.cmpi eq, %c8_i32, %c0_i32 : i32
    %c1_i32 = arith.constant 1 : i32
    %3 = arith.select %2, %c1_i32, %c8_i32 : i32
    %4 = vector.broadcast %3 : i32 to vector<8x1xi32>
    %5 = arith.remsi %1, %4 : vector<8x1xi32>
    %c0_i32_1 = arith.constant 0 : i32
    %6 = vector.broadcast %c0_i32_1 : i32 to vector<8x1xi32>
    %7 = arith.cmpi ne, %5, %6 : vector<8x1xi32>
    %c0_i32_2 = arith.constant 0 : i32
    %8 = vector.broadcast %c0_i32_2 : i32 to vector<8x1xi32>
    %9 = arith.cmpi slt, %5, %8 : vector<8x1xi32>
    %c0_i32_3 = arith.constant 0 : i32
    %10 = arith.cmpi slt, %3, %c0_i32_3 : i32
    %11 = vector.broadcast %10 : i1 to vector<8x1xi1>
    %12 = vector.broadcast %11 : vector<8x1xi1> to vector<8x1xi1>
    %13 = arith.xori %9, %12 : vector<8x1xi1>
    %14 = arith.andi %13, %7 : vector<8x1xi1>
    %15 = vector.broadcast %3 : i32 to vector<8x1xi32>
    %16 = arith.addi %5, %15 : vector<8x1xi32>
    %17 = arith.select %14, %16, %5 : vector<8x1xi1>, vector<8x1xi32>
    %c0_4 = arith.constant 0 : index
    %c0_5 = arith.constant 0 : index
    %18 = vector.load %arg5[%c0_4, %c0_5] : memref<1x32xf32, #tpu.memory_space<vmem>>, vector<1x32xf32>
    %19 = vector.shape_cast %18 : vector<1x32xf32> to vector<1x32xf32>
    %20 = vector.broadcast %19 : vector<1x32xf32> to vector<8x32xf32>
    %c0_6 = arith.constant 0 : index
    %c0_7 = arith.constant 0 : index
    %21 = vector.load %arg3[%c0_6, %c0_7] : memref<64x32xf32, #tpu.memory_space<vmem>>, vector<64x32xf32>
    %cst = arith.constant dense<0.000000e+00> : vector<8x32xf32>
    %22 = tpu.matmul %0, %21, %cst {dimension_numbers = #tpu.dot_dimension_numbers<[1], [0], [0], [1], [0, 0, 1, 1], [], []>, precision = #tpu.contract_precision<fp32>} : vector<8x64xf32>, vector<64x32xf32>, vector<8x32xf32> -> vector<8x32xf32>
    %23 = arith.addf %20, %22 : vector<8x32xf32>
    %c0_8 = arith.constant 0 : index
    %c0_9 = arith.constant 0 : index
    %24 = vector.load %arg2[%c0_8, %c0_9] : memref<64x32xf32, #tpu.memory_space<vmem>>, vector<64x32xf32>
    %cst_10 = arith.constant dense<0.000000e+00> : vector<8x32xf32>
    %25 = tpu.matmul %0, %24, %cst_10 {dimension_numbers = #tpu.dot_dimension_numbers<[1], [0], [0], [1], [0, 0, 1, 1], [], []>, precision = #tpu.contract_precision<fp32>} : vector<8x64xf32>, vector<64x32xf32>, vector<8x32xf32> -> vector<8x32xf32>
    %c1_i32_11 = arith.constant 1 : i32
    %26 = tpu.dynamic_rotate %25 by %c1_i32_11 dim 0 : vector<8x32xf32>, i32 -> vector<8x32xf32>
    %c0_i32_12 = arith.constant 0 : i32
    %27 = vector.broadcast %c0_i32_12 : i32 to vector<8x1xi32>
    %28 = arith.cmpi eq, %17, %27 : vector<8x1xi32>
    %cst_13 = arith.constant 0.000000e+00 : f32
    %29 = vector.shape_cast %28 : vector<8x1xi1> to vector<8x1xi1>
    %30 = vector.broadcast %29 : vector<8x1xi1> to vector<8x32xi1>
    %31 = vector.broadcast %cst_13 : f32 to vector<8x32xf32>
    %32 = arith.select %30, %31, %26 : vector<8x32xi1>, vector<8x32xf32>
    %33 = arith.addf %23, %32 : vector<8x32xf32>
    %34 = vector.extract_strided_slice %0 {offsets = [0, 0], sizes = [8, 32], strides = [1, 1]} : vector<8x64xf32> to vector<8x32xf32>
    %c0_14 = arith.constant 0 : index
    %c0_15 = arith.constant 0 : index
    %35 = vector.load %arg4[%c0_14, %c0_15] : memref<32x32xf32, #tpu.memory_space<vmem>>, vector<32x32xf32>
    %cst_16 = arith.constant dense<0.000000e+00> : vector<8x32xf32>
    %36 = tpu.matmul %34, %35, %cst_16 {dimension_numbers = #tpu.dot_dimension_numbers<[1], [0], [0], [1], [0, 0, 1, 1], [], []>, precision = #tpu.contract_precision<fp32>} : vector<8x32xf32>, vector<32x32xf32>, vector<8x32xf32> -> vector<8x32xf32>
    %c7_i32 = arith.constant 7 : i32
    %37 = tpu.dynamic_rotate %36 by %c7_i32 dim 0 : vector<8x32xf32>, i32 -> vector<8x32xf32>
    %c7_i32_17 = arith.constant 7 : i32
    %38 = vector.broadcast %c7_i32_17 : i32 to vector<8x1xi32>
    %39 = arith.cmpi eq, %17, %38 : vector<8x1xi32>
    %cst_18 = arith.constant 0.000000e+00 : f32
    %40 = vector.shape_cast %39 : vector<8x1xi1> to vector<8x1xi1>
    %41 = vector.broadcast %40 : vector<8x1xi1> to vector<8x32xi1>
    %42 = vector.broadcast %cst_18 : f32 to vector<8x32xf32>
    %43 = arith.select %41, %42, %37 : vector<8x32xi1>, vector<8x32xf32>
    %44 = arith.addf %33, %43 : vector<8x32xf32>
    %c0_19 = arith.constant 0 : index
    %c0_20 = arith.constant 0 : index
    %45 = vector.load %arg6[%c0_19, %c0_20] : memref<8x32xf32, #tpu.memory_space<vmem>>, vector<8x32xf32>
    tpu.vector_store %arg6[%c0_19, %c0_20], %44 {strides = array<i32>} : memref<8x32xf32, #tpu.memory_space<vmem>>, vector<8x32xf32>,
    return
  }
  func.func @transform_0(%arg0: i32) -> (i32, i32) {
    %c0_i32 = arith.constant 0 : i32
    %c0_i32_0 = arith.constant 0 : i32
    return %arg0, %c0_i32 : i32, i32
  }
  func.func @transform_1(%arg0: i32) -> (i32, i32) {
    %c0_i32 = arith.constant 0 : i32
    %c0_i32_0 = arith.constant 0 : i32
    %c0_i32_1 = arith.constant 0 : i32
    return %c0_i32, %c0_i32_0 : i32, i32
  }
  func.func @transform_2(%arg0: i32) -> (i32, i32) {
    %c0_i32 = arith.constant 0 : i32
    %c0_i32_0 = arith.constant 0 : i32
    %c0_i32_1 = arith.constant 0 : i32
    return %c0_i32, %c0_i32_0 : i32, i32
  }
  func.func @transform_3(%arg0: i32) -> (i32, i32) {
    %c0_i32 = arith.constant 0 : i32
    %c0_i32_0 = arith.constant 0 : i32
    %c0_i32_1 = arith.constant 0 : i32
    return %c0_i32, %c0_i32_0 : i32, i32
  }
  func.func @transform_4(%arg0: i32) -> (i32, i32) {
    %c0_i32 = arith.constant 0 : i32
    %c0_i32_0 = arith.constant 0 : i32
    %c0_i32_1 = arith.constant 0 : i32
    return %c0_i32, %c0_i32_0 : i32, i32
  }
  func.func @transform_5(%arg0: i32) -> (i32, i32) {
    %c0_i32 = arith.constant 0 : i32
    %c0_i32_0 = arith.constant 0 : i32
    return %arg0, %c0_i32 : i32, i32
  }
}

</mosaic_0001>

<bundles_post_ra>
// kernel: tpu_custom_call.1
= control target key start
LH: loop header
LB: loop body
LE: loop exit
PB: predicated region body
PF: predicated region fallthrough
CT: control target
= control target key end

     0   :  { %10 = vsyncpa [#allocation3], 0  ;;  %s3190_s0 = inlined_call_operand.vmem [shape: f32[16,64], index: 0, kind: input, shape index: {}]   ;;  %s3191_s1 = inlined_call_operand.vmem [shape: f32[64,32], index: 1, kind: input, shape index: {}]   ;;  %s3192_s2 = inlined_call_operand.vmem [shape: f32[64,32], index: 2, kind: input, shape index: {}]   ;;  %s3193_s3 = inlined_call_operand.vmem [shape: f32[32,32], index: 3, kind: input, shape index: {}]   ;;  %s3194_s4 = inlined_call_operand.vmem [shape: f32[1,32], index: 4, kind: input, shape index: {}]   ;;  %s3195_s5 = inlined_call_operand.hbm [shape: f32[16,32], index: 5, kind: output, shape index: {}]  }
   0x1   :  { %12 = vsyncpa [#allocation3 + $0x1], 0  ;;  %s2698_s18 = smov 0   ;;  %s2700_s19 = smov 0  }
   0x2   :  { %s2702_s20 = smov 0   ;;  %s2704_s21 = smov 0  }
   0x3 LB: > { %s2719_s22 = sadd.s32 4294967295, %s2662_s21   ;;  %s1915_s23 = sadd.s32 4294967294, %s2662_s21   ;;  %s2662_s21 = sphi %s2704_s21, %s3201_s21   ;;  %s2658_s20 = sphi %s2702_s20, %s3200_s20   ;;  %s2654_s19 = sphi %s2700_s19, %s3199_s19   ;;  %s2650_s18 = sphi %s2698_s18, %s3198_s18  }
   0x4   : > { %s2723_s24 = sadd.s32 1, %s2662_s21   ;;  %s135_s25 = sadd.s32 1, %s2658_s20 }
   0x5   : > { %s132_s26 = ssub.s32 %s2662_s21, %s2723_s24  ;;  %p145_p0 = scmp.ne.s32.totalorder %s2658_s20, %s2654_s19 }
   0x6   : > { %p133_p1 = scmp.eq.s32.totalorder %s132_s26, 0  ;;  %p146_p2 = scmp.eq.s32.totalorder %s2719_s22, 1 }
   0x7   : > { %p151_p3 = scmp.ne.s32.totalorder %s2654_s19, %s2650_s18  ;;  %p152_p4 = scmp.eq.s32.totalorder %s1915_s23, 1 }
   0x8   : > { %s2734_s27 = scalar_select %p133_p1, %s2658_s20, %s135_s25  }
   0x9   : > { %p2736_p5 = por %p146_p2, %p145_p0  ;;  %p2740_p6 = por %p152_p4, %p151_p3 }
   0xa   : > { %p1918_p7 = scmp.ge.s32.totalorder %s2662_s21, 1  ;;  %p189_p8 = scmp.lt.s32.totalorder %s2662_s21, 3 }
   0xc   : > { %p190_p9 = pnand %p1918_p7, %p189_p8 }
   0xd   : > { %v242_v0 = vld [vmem:[%s3192_s2] sm:$0xff] (!%p190_p9)  ;;  %v243_v1 = vld [vmem:[%s3192_s2 + $0x8] sm:$0xff] (!%p190_p9)  ;;  %v244_v2 = vld [vmem:[%s3192_s2 + $0x10] sm:$0xff] (!%p190_p9)  ;;  %v2664_v3 = vmov (!%p190_p9), 0.0|0.0   ;;  %vm2665_vm0 = vmmov (!%p190_p9), 0   ;;  %v2666_v13 = vmov (!%p190_p9), 0.0  }
   0xe   : > { %193 = sbr.rel (%p190_p9) target bundleno = 380 (0x17c), region = 40  ;;  %2358 = vmatprep.subr.bf16.mxu1 (!%p190_p9), %v2664_v3  ;;  %v255_v4 = vand.u32 (!%p190_p9), 4294901760, %v242_v0  ;;  %v258_v5 = vand.u32 (!%p190_p9), 4294901760, %v243_v1  ;;  %2382 = vmatprep.subr.bf16.mxu0 (!%p190_p9), %v2664_v3  ;;  %v245_v6 = vld [vmem:[%s3192_s2 + $0x18] sm:$0xff] (!%p190_p9)  ;;  %v261_v7 = vand.u32 (!%p190_p9), 4294901760, %v244_v2  ;;  %v246_v8 = vld [vmem:[%s3192_s2 + $0x20] sm:$0xff] (!%p190_p9) }
   0xf   : > { %v247_v9 = vld [vmem:[%s3192_s2 + $0x28] sm:$0xff] (!%p190_p9)  ;;  %v264_v10 = vand.u32 (!%p190_p9), 4294901760, %v245_v6  ;;  %v267_v11 = vand.u32 (!%p190_p9), 4294901760, %v246_v8  ;;  %2080 = vmatprep.mubr.msk.f32.mxu1 (!%p190_p9), %vm2665_vm0, %v2666_v13  ;;  %p216_p10 = scmp.lt.s32.totalorder (!%p190_p9), %s2719_s22, 1  ;;  %2118 = vmatprep.mubr.msk.f32.mxu0 (!%p190_p9), %vm2665_vm0, %v2666_v13  ;;  %v248_v19 = vld [vmem:[%s3192_s2 + $0x30] sm:$0xff] (!%p190_p9)  ;;  %v249_v20 = vld [vmem:[%s3192_s2 + $0x38] sm:$0xff] (!%p190_p9) }
  0x10   : > { %v270_v12 = vand.u32 (!%p190_p9), 4294901760, %v247_v9  ;;  %v2771_v14 = vpack.c.bf16 (!%p190_p9), %v258_v5, %v255_v4  ;;  %v2773_v15 = vsub.f32 (!%p190_p9), %v242_v0, %v255_v4  ;;  %v2775_v16 = vsub.f32 (!%p190_p9), %v243_v1, %v258_v5  ;;  %s213_s23 = sand.u32 (!%p190_p9), 1, %s2654_s19  }
  0x11   : > { %v2777_v17 = vsub.f32 (!%p190_p9), %v244_v2, %v261_v7  ;;  %v2779_v18 = vsub.f32 (!%p190_p9), %v245_v6, %v264_v10  ;;  %v2793_v24 = vpack.c.bf16 (!%p190_p9), %v264_v10, %v261_v7  ;;  %v2796_v25 = vsub.f32 (!%p190_p9), %v246_v8, %v267_v11  ;;  %v792_v8 = vld [vmem:[%s3191_s1] sm:$0xff] (!%p190_p9)  ;;  %s1919_s25 = sshll.u32 (!%p190_p9), %s213_s23, 3  ;;  %s1843_s12 = scalar_lea.sflag (!%p190_p9), [#allocation3], %s213_s23 }
  0x12   : > { %2360 = vmatpush3.bf16.msra.mxu1 (!%p190_p9), %v2771_v14  ;;  %v340_v21 = vand.u32 (!%p190_p9), 4294901760, %v2773_v15  ;;  %v347_v22 = vand.u32 (!%p190_p9), 4294901760, %v2775_v16  ;;  %v2383_v23 = vpack.c.bf16 (!%p190_p9), %v2775_v16, %v2773_v15  ;;  %v2798_v26 = vsub.f32 (!%p190_p9), %v247_v9, %v270_v12  ;;  %v793_v9 = vld [vmem:[%s3191_s1 + $0x8] sm:$0xff] (!%p190_p9)  ;;  %s215_s7 = scalar_lea.vmem (!%p190_p9), [#allocation2], %s1919_s25 }
  0x13   : > { %2361 = vmatprep.subr.bf16.mxu1 (!%p190_p9), %v2664_v3  ;;  %vm250_vm1 = vcmask (!%p190_p9), 523264   ;;  %v2386_v27 = vpack.c.bf16 (!%p190_p9), %v2779_v18, %v2777_v17  ;;  %v273_v28 = vand.u32 (!%p190_p9), 4294901760, %v248_v19  ;;  %v276_v29 = vand.u32 (!%p190_p9), 4294901760, %v249_v20  ;;  %s1856_s8 = sshll.u32 (!%p190_p9), %s215_s7, 4  ;;  %s3149_s8 = int_to_ptr.vmem [resolvable:$true] %s1856_s8 }
  0x14   : > { %2384 = vmatpush3.bf16.msra.mxu0 (!%p190_p9), %v2383_v23  ;;  %v341_v30 = vsub.f32 (!%p190_p9), %v2773_v15, %v340_v21  ;;  %v348_v32 = vsub.f32 (!%p190_p9), %v2775_v16, %v347_v22  ;;  %v354_v33 = vand.u32 (!%p190_p9), 4294901760, %v2777_v17  ;;  %v2812_v34 = vpack.c.bf16 (!%p190_p9), %v270_v12, %v267_v11  ;;  %v794_v16 = vld [vmem:[%s3191_s1 + $0x10] sm:$0xff] (!%p190_p9)  ;;  %v796_v23 = vld [vmem:[%s3191_s1 + $0x20] sm:$0xff] (!%p190_p9)  ;;  %s2600_s13 = scalar_lea.vmem (!%p190_p9), %s3149_s8, 128 }
  0x15   : > { %s217_s30 = scalar_select %p216_p10, %s2719_s22, 1  ;;  %2385 = vmatprep.subr.bf16.mxu0 %v2664_v3  ;;  %v361_v36 = vand.u32 4294901760, %v2779_v18  ;;  %v2389_v38 = vpack.c.bf16 %v2798_v26, %v2796_v25  ;;  %v381_v39 = vsub.f32 %v248_v19, %v273_v28  ;;  %v388_v40 = vsub.f32 %v249_v20, %v276_v29 }
  0x16   : > { %2363 = vmatpush3.bf16.msra.mxu1 %v2793_v24  ;;  %v342_v41 = vand.u32 4294901760, %v341_v30  ;;  %v349_v43 = vand.u32 4294901760, %v348_v32  ;;  %v355_v44 = vsub.f32 %v2777_v17, %v354_v33  ;;  %v368_v45 = vand.u32 4294901760, %v2796_v25  ;;  %v795_v17 = vld [vmem:[%s3191_s1 + $0x18] sm:$0xff]  ;;  %p2601_p11 = scmp.ne.s32.totalorder %s3149_s8, %s2600_s13 }
  0x17   : > { %s1920_s6 = sshll.u32 %s217_s30, 3  ;;  %2364 = vmatprep.subr.bf16.mxu1 %v2664_v3  ;;  %v2828_v46 = vpack.c.bf16 %v276_v29, %v273_v28  ;;  %v362_v47 = vsub.f32 %v2779_v18, %v361_v36  ;;  %v375_v48 = vand.u32 4294901760, %v2798_v26  ;;  %v2392_v50 = vpack.c.bf16 %v388_v40, %v381_v39  ;;  %v798_v29 = vld [vmem:[%s3191_s1 + $0x30] sm:$0xff]  ;;  %v799_v30 = vld [vmem:[%s3191_s1 + $0x38] sm:$0xff] }
  0x18   : > { %s219_s9 = scalar_lea.vmem %s3190_s0, %s1920_s6  ;;  %2387 = vmatpush3.bf16.msra.mxu0 %v2386_v27  ;;  %v2371_v52 = vpack.c.bf16 %v349_v43, %v342_v41  ;;  %v356_v53 = vand.u32 4294901760, %v355_v44  ;;  %v369_v54 = vsub.f32 %v2796_v25, %v368_v45  ;;  %v382_v57 = vand.u32 4294901760, %v381_v39  ;;  %v797_v25 = vld [vmem:[%s3191_s1 + $0x28] sm:$0xff]  ;;  %s1923_s6 = sshll.u32 %s2719_s22, 7 }
  0x19   : > { %v2807_v31 = vld [vmem:[%s219_s9] sm:$0xff]  ;;  %2388 = vmatprep.subr.bf16.mxu0 %v2664_v3  ;;  %v363_v55 = vand.u32 4294901760, %v362_v47  ;;  %v376_v56 = vsub.f32 %v2798_v26, %v375_v48  ;;  %v389_v58 = vand.u32 4294901760, %v388_v40  ;;  %v2407_v60 = vpack.c.bf16 %v347_v22, %v340_v21  ;;  %s3147_s11 = scalar_lea.hbm %s3195_s5, %s1923_s6  ;;  %p2602_p12 = pnand %p2601_p11, %p2736_p5 }
  0x1a   : > { %v252_v35 = vsel %vm250_vm1, %v2807_v31, 0  ;;  %2366 = vmatpush3.bf16.msra.mxu1 %v2812_v34  ;;  %v370_v61 = vand.u32 4294901760, %v369_v54  ;;  %v383_v0 = vsub.f32 %v381_v39, %v382_v57  ;;  %v2410_v2 = vpack.c.bf16 %v361_v36, %v354_v33  ;;  %s2667_s22 = smov [#allocation2]  }
  0x1b   : > { %v2817_v37 = vand.u32 4294901760, %v252_v35  ;;  %2367 = vmatprep.subr.bf16.mxu1 %v2664_v3  ;;  %v2374_v62 = vpack.c.bf16 %v363_v55, %v356_v53  ;;  %v377_v63 = vand.u32 4294901760, %v376_v56  ;;  %v390_v1 = vsub.f32 %v388_v40, %v389_v58  ;;  %p2603_p13 = pneg %p2602_p12  ;;  %s2604_s14 = sshll.u32 %s2667_s22, 4  ;;  %s2605_s14 = int_to_ptr.vmem [resolvable:$false] %s2604_s14 }
  0x1c   : > { %2390 = vmatpush3.bf16.msra.mxu0 %v2389_v38  ;;  %v384_v5 = vand.u32 4294901760, %v383_v0  ;;  %v2413_v7 = vpack.c.bf16 %v375_v48, %v368_v45  ;;  %v2416_v11 = vpack.c.bf16 %v389_v58, %v382_v57  ;;  %v801_v12 = vand.u32 4294901760, %v792_v8  ;;  %v1344_v0 = vld [vmem:[%s3193_s3 + $0x8] sm:$0xff]  ;;  %s2606_s15 = scalar_lea.vmem %s2605_s14, 256  ;;  %p2607_p0 = scmp.lt.s32.totalorder %s3149_s8, %s2605_s14 }
  0x1d   : > { %v2823_v42 = vsub.f32 %v252_v35, %v2817_v37  ;;  %2391 = vmatprep.subr.bf16.mxu0 %v2664_v3  ;;  %v2377_v4 = vpack.c.bf16 %v377_v63, %v370_v61  ;;  %v391_v6 = vand.u32 4294901760, %v390_v1  ;;  %v804_v15 = vand.u32 4294901760, %v793_v9  ;;  %v1343_v63 = vld [vmem:[%s3193_s3] sm:$0xff]  ;;  %p2608_p1 = scmp.lt.s32.totalorder %s2606_s15, %s2600_s13 }
  0x1e   : > { %2369 = vmatpush3.bf16.msra.mxu1 %v2828_v46  ;;  %v2871_v18 = vsub.f32 %v792_v8, %v801_v12  ;;  %v807_v21 = vand.u32 4294901760, %v794_v16  ;;  %v810_v22 = vand.u32 4294901760, %v795_v17  ;;  %v813_v28 = vand.u32 4294901760, %v796_v23 }
  0x1f   : > { %v2834_v49 = vand.u32 4294901760, %v2823_v42  ;;  %2370 = vmatprep.subr.bf16.mxu1 %v2664_v3  ;;  %v2380_v10 = vpack.c.bf16 %v391_v6, %v384_v5  ;;  %v2873_v19 = vpack.c.bf16 %v804_v15, %v801_v12  ;;  %v2875_v20 = vsub.f32 %v793_v9, %v804_v15  ;;  %p2609_p2 = por %p2608_p1, %p2607_p0 }
  0x20   : > { %2393 = vmatpush3.bf16.msra.mxu0 %v2392_v50  ;;  %v2890_v26 = vsub.f32 %v794_v16, %v807_v21  ;;  %v2892_v27 = vsub.f32 %v795_v17, %v810_v22  ;;  %v2901_v32 = vpack.c.bf16 %v810_v22, %v807_v21  ;;  %v816_v33 = vand.u32 4294901760, %v797_v25 }
  0x21   : > { %v330_v51 = vsub.f32 %v2823_v42, %v2834_v49  ;;  %2406 = vmatprep.subr.bf16.mxu0 %v2664_v3  ;;  %v886_v35 = vand.u32 4294901760, %v2871_v18  ;;  %v893_v36 = vand.u32 4294901760, %v2875_v20  ;;  %v819_v38 = vand.u32 4294901760, %v798_v29  ;;  %p2610_p3 = pnand %p2609_p2, %p2603_p13 }
  0x22   : > { %v822_v39 = vand.u32 4294901760, %v799_v30  ;;  %v2910_v40 = vsub.f32 %v796_v23, %v813_v28  ;;  %v900_v41 = vand.u32 4294901760, %v2890_v26  ;;  %v907_v43 = vand.u32 4294901760, %v2892_v27 }
  0x23   : > { %v2843_v59 = vand.u32 4294901760, %v330_v51  ;;  %2119 = vmatmul.mubr.f32.vlgmr.msra.gmra.mrb[0].mxu0 %v2823_v42  ;;  %v2915_v44 = vpack.c.bf16 %v816_v33, %v813_v28  ;;  %v2917_v45 = vsub.f32 %v797_v25, %v816_v33  ;;  %v887_v47 = vsub.f32 %v2871_v18, %v886_v35 }
  0x24   : > { %2408 = vmatpush3.bf16.msra.mxu0 %v2407_v60  ;;  %2156 = vmatprep.mubr.msk.f32.mxu0 %vm2665_vm0, %v2666_v13  ;;  %v894_v48 = vsub.f32 %v2875_v20, %v893_v36  ;;  %v2927_v50 = vpack.c.bf16 %v822_v39, %v819_v38  ;;  %v2930_v51 = vsub.f32 %v798_v29, %v819_v38  ;;  %v914_v54 = vand.u32 4294901760, %v2910_v40 }
  0x25   : > { %2081 = vmatmul.mubr.f32.vlgmr.msra.gmra.mrb[0].mxu1 %v2843_v59  ;;  %2409 = vmatprep.subr.bf16.mxu0 %v2664_v3  ;;  %v901_v53 = vsub.f32 %v2890_v26, %v900_v41  ;;  %v888_v55 = vand.u32 4294901760, %v887_v47  ;;  %v908_v57 = vsub.f32 %v2892_v27, %v907_v43  ;;  %v921_v58 = vand.u32 4294901760, %v2917_v45 }
  0x26   : > { %2372 = vmatpush3.bf16.msra.mxu1 %v2371_v52  ;;  %2099 = vmatprep.mubr.msk.f32.mxu1 %vm2665_vm0, %v2666_v13  ;;  %v2932_v52 = vsub.f32 %v799_v30, %v822_v39  ;;  %v895_v56 = vand.u32 4294901760, %v894_v48  ;;  %v915_v60 = vsub.f32 %v2910_v40, %v914_v54  ;;  %v928_v61 = vand.u32 4294901760, %v2930_v51 }
  0x27   : > { %2373 = vmatprep.subr.bf16.mxu1 %v2664_v3  ;;  %vm1347_vm2 = vcmask 261120   ;;  %v922_v5 = vsub.f32 %v2917_v45, %v921_v58  ;;  %v1351_v6 = vand.u32 4294901760, %v1343_v63 }
  0x28   : > { %2411 = vmatpush3.bf16.msra.mxu0 %v2410_v2  ;;  %v2443_v1 = vpack.c.bf16 %v895_v56, %v888_v55  ;;  %v902_v2 = vand.u32 4294901760, %v901_v53  ;;  %v1348_v8 = vsel %vm1347_vm2, %v2807_v31, 0  ;;  %v916_v9 = vand.u32 4294901760, %v915_v60 }
  0x29   : > { %2412 = vmatprep.subr.bf16.mxu0 %v2664_v3  ;;  %v923_v12 = vand.u32 4294901760, %v922_v5  ;;  %v929_v31 = vsub.f32 %v2930_v51, %v928_v61  ;;  %v2985_v15 = vand.u32 4294901760, %v1348_v8  ;;  %v2988_v16 = vsub.f32 %v1343_v63, %v1351_v6 }
  0x2a   : > { %2375 = vmatpush3.bf16.msra.mxu1 %v2374_v62  ;;  %v935_v62 = vand.u32 4294901760, %v2932_v52 }
  0x2b   : > { %2376 = vmatprep.subr.bf16.mxu1 %v2664_v3  ;;  %v2449_v23 = vpack.c.bf16 %v923_v12, %v916_v9  ;;  %v930_v25 = vand.u32 4294901760, %v929_v31  ;;  %v2995_v29 = vsub.f32 %v1348_v8, %v2985_v15  ;;  %v1432_v33 = vand.u32 4294901760, %v2988_v16 }
  0x2c   : > { %2414 = vmatpush3.bf16.msra.mxu0 %v2413_v7  ;;  %v1354_v7 = vand.u32 4294901760, %v1344_v0  ;;  %v2461_v9 = vpack.c.bf16 %v2917_v45, %v2910_v40  ;;  %v2479_v31 = vpack.c.bf16 %v893_v36, %v886_v35 }
  0x2d   : > { %2415 = vmatprep.subr.bf16.mxu0 %v2664_v3  ;;  %v1421_v48 = vand.u32 4294901760, %v2995_v29 }
  0x2e   : > { %2378 = vmatpush3.bf16.msra.mxu1 %v2377_v4  ;;  %v909_v4 = vand.u32 4294901760, %v908_v57  ;;  %v2990_v17 = vsub.f32 %v1344_v0, %v1354_v7  ;;  %v3006_v47 = vpack.c.bf16 %v1354_v7, %v1351_v6  ;;  %v2455_v57 = vpack.c.bf16 %v2875_v20, %v2871_v18 }
  0x2f   : > { %2379 = vmatprep.subr.bf16.mxu1 %v2664_v3  ;;  %v1422_v60 = vsub.f32 %v2995_v29, %v1421_v48  ;;  %v2482_v18 = vpack.c.bf16 %v907_v43, %v900_v41  ;;  %v2488_v20 = vpack.c.bf16 %v935_v62, %v928_v61  ;;  %v221_v61 = vlaneseq }
  0x30   : > { %2417 = vmatpush3.bf16.msra.mxu0 %v2416_v11  ;;  %v2446_v11 = vpack.c.bf16 %v909_v4, %v902_v2  ;;  %v1439_v38 = vand.u32 4294901760, %v2990_v17  ;;  %v2458_v4 = vpack.c.bf16 %v2892_v27, %v2890_v26 }
  0x31   : > { %2430 = vmatprep.subr.bf16.mxu0 %v2664_v3  ;;  %v1423_v5 = vand.u32 4294901760, %v1422_v60 }
  0x32   : > { %2381 = vmatpush3.bf16.msra.mxu1 %v2380_v10  ;;  %v1345_v10 = vld [vmem:[%s3193_s3 + $0x10] sm:$0xff]  ;;  %v1440_v53 = vsub.f32 %v2990_v17, %v1439_v38 }
  0x33   : > { %2394 = vmatprep.subr.bf16.mxu1 %v2664_v3  ;;  %2157 = vmatmul.mubr.f32.vlgmr.msra.gmra.mrb[2].mxu0 %v2817_v37  ;;  %v1357_v21 = vand.u32 4294901760, %v1345_v10 }
  0x34   : > { %2432 = vmatpush3.bf16.msra.mxu0 %v2873_v19  ;;  %2194 = vmatprep.mubr.msk.f32.mxu0 %vm2665_vm0, %v2666_v13  ;;  %v1441_v0 = vand.u32 4294901760, %v1440_v53 }
  0x35   : > { %2100 = vmatmul.mubr.f32.vlgmr.msra.gmra.mrb[2].mxu1 %v2817_v37  ;;  %2433 = vmatprep.subr.bf16.mxu0 %v2664_v3 }
  0x36   : > { %2396 = vmatpush3.bf16.msra.mxu1 %v2771_v14  ;;  %2137 = vmatprep.mubr.msk.f32.mxu1 %vm2665_vm0, %v2666_v13 }
  0x37   : > { %2397 = vmatprep.subr.bf16.mxu1 %v2664_v3 }
  0x38   : > { %2435 = vmatpush3.bf16.msra.mxu0 %v2901_v32 }
  0x39   : > { %2436 = vmatprep.subr.bf16.mxu0 %v2664_v3 }
  0x3a   : > { %2399 = vmatpush3.bf16.msra.mxu1 %v2793_v24 }
  0x3b   : > { %2400 = vmatprep.subr.bf16.mxu1 %v2664_v3 }
  0x3c   : > { %2438 = vmatpush3.bf16.msra.mxu0 %v2915_v44 }
  0x3d   : > { %2439 = vmatprep.subr.bf16.mxu0 %v2664_v3 }
  0x3e   : > { %2402 = vmatpush3.bf16.msra.mxu1 %v2812_v34 }
  0x3f   : > { %2403 = vmatprep.subr.bf16.mxu1 %v2664_v3 }
  0x40   : > { %2441 = vmatpush3.bf16.msra.mxu0 %v2927_v50 }
  0x41   : > { %2442 = vmatprep.subr.bf16.mxu0 %v2664_v3 }
  0x42   : > { %2405 = vmatpush3.bf16.msra.mxu1 %v2828_v46 }
  0x43   : > { %2418 = vmatprep.subr.bf16.mxu1 %v2664_v3  ;;  %2195 = vmatmul.mubr.f32.vlgmr.msra.gmra.mrb[4].mxu0 %v2843_v59  ;;  %v936_v59 = vsub.f32 %v2932_v52, %v935_v62  ;;  %v222_v62 = vshrl.u32 %v221_v61, 7 }
  0x44   : > { %2444 = vmatpush3.bf16.msra.mxu0 %v2443_v1  ;;  %2213 = vmatprep.mubr.msk.f32.mxu0 %vm2665_vm0, %v2666_v13 }
  0x45   : > { %2138 = vmatmul.mubr.f32.vlgmr.msra.gmra.mrb[4].mxu1 %v2834_v49  ;;  %2445 = vmatprep.subr.bf16.mxu0 %v2664_v3  ;;  %v937_v28 = vand.u32 4294901760, %v936_v59 }
  0x46   : > { %2420 = vmatpush3.bf16.msra.mxu1 %v2771_v14  ;;  %2175 = vmatprep.mubr.msk.f32.mxu1 %vm2665_vm0, %v2666_v13  ;;  %v1346_v14 = vld [vmem:[%s3193_s3 + $0x18] sm:$0xff] }
  0x47   : > { %2421 = vmatprep.subr.bf16.mxu1 %v2664_v3  ;;  %v1360_v22 = vand.u32 4294901760, %v1346_v14  ;;  %v2452_v39 = vpack.c.bf16 %v937_v28, %v930_v25 }
  0x48   : > { %2447 = vmatpush3.bf16.msra.mxu0 %v2446_v11  ;;  %v2515_v11 = vpack.c.bf16 %v2990_v17, %v2988_v16 }
  0x49   : > { %2448 = vmatprep.subr.bf16.mxu0 %v2664_v3  ;;  %v3000_v30 = vsub.f32 %v1346_v14, %v1360_v22  ;;  %v2464_v14 = vpack.c.bf16 %v2932_v52, %v2930_v51 }
  0x4a   : > { %2423 = vmatpush3.bf16.msra.mxu1 %v2793_v24  ;;  %v2998_v24 = vsub.f32 %v1345_v10, %v1357_v21 }
  0x4b   : > { %2424 = vmatprep.subr.bf16.mxu1 %v2664_v3  ;;  %v1453_v56 = vand.u32 4294901760, %v3000_v30 }
  0x4c   : > { %2450 = vmatpush3.bf16.msra.mxu0 %v2449_v23  ;;  %v1446_v55 = vand.u32 4294901760, %v2998_v24  ;;  %v2518_v12 = vpack.c.bf16 %v3000_v30, %v2998_v24 }
  0x4d   : > { %2451 = vmatprep.subr.bf16.mxu0 %v2664_v3  ;;  %v1454_v2 = vsub.f32 %v3000_v30, %v1453_v56 }
  0x4e   : > { %2426 = vmatpush3.bf16.msra.mxu1 %v2812_v34  ;;  %v1433_v34 = vsub.f32 %v2988_v16, %v1432_v33  ;;  %v1447_v1 = vsub.f32 %v2998_v24, %v1446_v55  ;;  %v2530_v59 = vpack.c.bf16 %v1453_v56, %v1446_v55  ;;  %v1921_v16 = vld [vmem:[%s3194_s4] ss:$0 sm:$0xff] }
  0x4f   : > { %2427 = vmatprep.subr.bf16.mxu1 %v2664_v3  ;;  %v1455_v8 = vand.u32 4294901760, %v1454_v2 }
  0x50   : > { %2453 = vmatpush3.bf16.msra.mxu0 %v2452_v39  ;;  %v1434_v63 = vand.u32 4294901760, %v1433_v34  ;;  %v1448_v7 = vand.u32 4294901760, %v1447_v1 }
  0x51   : > { %2454 = vmatprep.subr.bf16.mxu0 %v2664_v3 }
  0x52   : > { %2429 = vmatpush3.bf16.msra.mxu1 %v2828_v46  ;;  %v3023_v46 = vpack.c.bf16 %v1360_v22, %v1357_v21  ;;  %v2509_v6 = vpack.c.bf16 %v1441_v0, %v1434_v63  ;;  %v2512_v10 = vpack.c.bf16 %v1455_v8, %v1448_v7 }
  0x53   : > { %2502 = vmatprep.subr.bf16.mxu1 %v2664_v3  ;;  %2214 = vmatmul.mubr.f32.vlgmr.msra.gmra.mrb[4].mxu0 %v2817_v37 }
  0x54   : > { %2456 = vmatpush3.bf16.msra.mxu0 %v2455_v57  ;;  %2232 = vmatprep.mubr.msk.f32.mxu0 %vm2665_vm0, %v2666_v13 }
  0x55   : > { %2176 = vmatmul.mubr.f32.vlgmr.msra.gmra.mrb[6].mxu1 %v2817_v37  ;;  %2457 = vmatprep.subr.bf16.mxu0 %v2664_v3 }
  0x56   : > { %2504 = vmatpush3.bf16.msra.mxu1 %v3006_v47  ;;  %2300 = vmatprep.mubr.msk.f32.mxu1 %vm2665_vm0, %v2666_v13 }
  0x57   : > { %2505 = vmatprep.subr.bf16.mxu1 %v2664_v3 }
  0x58   : > { %2459 = vmatpush3.bf16.msra.mxu0 %v2458_v4 }
  0x59   : > { %2460 = vmatprep.subr.bf16.mxu0 %v2664_v3 }
  0x5a   : > { %2507 = vmatpush3.bf16.msra.mxu1 %v3023_v46 }
  0x5b   : > { %2508 = vmatprep.subr.bf16.mxu1 %v2664_v3 }
  0x5c   : > { %2462 = vmatpush3.bf16.msra.mxu0 %v2461_v9 }
  0x5d   : > { %2301 = vmatmul.mubr.f32.vlgmr.msra.gmra.mrb[8].mxu1 %v1423_v5  ;;  %2463 = vmatprep.subr.bf16.mxu0 %v2664_v3 }
  0x5e   : > { %2510 = vmatpush3.bf16.msra.mxu1 %v2509_v6  ;;  %2311 = vmatprep.mubr.msk.f32.mxu1 %vm2665_vm0, %v2666_v13 }
  0x5f   : > { %2511 = vmatprep.subr.bf16.mxu1 %v2664_v3 }
  0x60   : > { %2465 = vmatpush3.bf16.msra.mxu0 %v2464_v14 }
  0x61   : > { %2466 = vmatprep.subr.bf16.mxu0 %v2664_v3 }
  0x62   : > { %2513 = vmatpush3.bf16.msra.mxu1 %v2512_v10 }
  0x63   : > { %2514 = vmatprep.subr.bf16.mxu1 %v2664_v3  ;;  %2233 = vmatmul.mubr.f32.vlgmr.msra.gmra.mrb[4].mxu0 %v2823_v42  ;;  %v2527_v42 = vpack.c.bf16 %v1439_v38, %v1432_v33 }
  0x64   : > { %2468 = vmatpush3.bf16.msra.mxu0 %v2873_v19  ;;  %2251 = vmatprep.mubr.msk.f32.mxu0 %vm2665_vm0, %v2666_v13 }
  0x65   : > { %2312 = vmatmul.mubr.f32.vlgmr.msra.gmra.mrb[8].mxu1 %v2985_v15  ;;  %2469 = vmatprep.subr.bf16.mxu0 %v2664_v3 }
  0x66   : > { %2516 = vmatpush3.bf16.msra.mxu1 %v2515_v11  ;;  %2322 = vmatprep.mubr.msk.f32.mxu1 %vm2665_vm0, %v2666_v13 }
  0x67   : > { %2517 = vmatprep.subr.bf16.mxu1 %v2664_v3 }
  0x68   : > { %2471 = vmatpush3.bf16.msra.mxu0 %v2901_v32 }
  0x69   : > { %2472 = vmatprep.subr.bf16.mxu0 %v2664_v3 }
  0x6a   : > { %2519 = vmatpush3.bf16.msra.mxu1 %v2518_v12 }
  0x6b   : > { %2520 = vmatprep.subr.bf16.mxu1 %v2664_v3 }
  0x6c   : > { %2474 = vmatpush3.bf16.msra.mxu0 %v2915_v44 }
  0x6d   : > { %2323 = vmatmul.mubr.f32.vlgmr.msra.gmra.mrb[8].mxu1 %v2995_v29  ;;  %2475 = vmatprep.subr.bf16.mxu0 %v2664_v3 }
  0x6e   : > { %2522 = vmatpush3.bf16.msra.mxu1 %v3006_v47  ;;  %2333 = vmatprep.mubr.msk.f32.mxu1 %vm2665_vm0, %v2666_v13 }
  0x6f   : > { %2523 = vmatprep.subr.bf16.mxu1 %v2664_v3 }
  0x70   : > { %2477 = vmatpush3.bf16.msra.mxu0 %v2927_v50 }
  0x71   : > { %2478 = vmatprep.subr.bf16.mxu0 %v2664_v3 }
  0x72   : > { %2525 = vmatpush3.bf16.msra.mxu1 %v3023_v46 }
  0x73   : > { %2526 = vmatprep.subr.bf16.mxu1 %v2664_v3  ;;  %2252 = vmatmul.mubr.f32.vlgmr.msra.gmra.mrb[4].mxu0 %v2834_v49  ;;  %v2485_v49 = vpack.c.bf16 %v921_v58, %v914_v54 }
  0x74   : > { %2480 = vmatpush3.bf16.msra.mxu0 %v2479_v31  ;;  %2270 = vmatprep.mubr.msk.f32.mxu0 %vm2665_vm0, %v2666_v13 }
  0x75   : > { %2334 = vmatmul.mubr.f32.vlgmr.msra.gmra.mrb[8].mxu1 %v1421_v48  ;;  %2481 = vmatprep.subr.bf16.mxu0 %v2664_v3 }
  0x76   : > { %2528 = vmatpush3.bf16.msra.mxu1 %v2527_v42  ;;  %2344 = vmatprep.mubr.msk.f32.mxu1 %vm2665_vm0, %v2666_v13 }
  0x77   : > { %2529 = vmatprep.subr.bf16.mxu1 %v2664_v3 }
  0x78   : > { %2483 = vmatpush3.bf16.msra.mxu0 %v2482_v18 }
  0x79   : > { %2484 = vmatprep.subr.bf16.mxu0 %v2664_v3 }
  0x7a   : > { %2531 = vmatpush3.bf16.msra.mxu1 %v2530_v59 }
  0x7b   : > { %2532 = vmatprep.subr.bf16.mxu1 %v2664_v3 }
  0x7c   : > { %2486 = vmatpush3.bf16.msra.mxu0 %v2485_v49 }
  0x7d   : > { %2345 = vmatmul.mubr.f32.vlgmr.msra.gmra.mrb[8].mxu1 %v2985_v15  ;;  %2487 = vmatprep.subr.bf16.mxu0 %v2664_v3 }
  0x7e   : > { %2534 = vmatpush3.bf16.msra.mxu1 %v3006_v47  ;;  %2355 = vmatprep.mubr.msk.f32.mxu1 %vm2665_vm0, %v2666_v13 }
  0x7f   : > { %2535 = vmatprep.subr.bf16.mxu1 %v2664_v3 }
  0x80   : > { %2489 = vmatpush3.bf16.msra.mxu0 %v2488_v20 }
  0x81   : > { %2490 = vmatprep.subr.bf16.mxu0 %v2664_v3 }
  0x82   : > { %2537 = vmatpush3.bf16.msra.mxu1 %v3023_v46 }
  0x83   : > { %2271 = vmatmul.mubr.f32.vlgmr.msra.gmra.mrb[4].mxu0 %v2817_v37 }
  0x84   : > { %2492 = vmatpush3.bf16.msra.mxu0 %v2873_v19  ;;  %2289 = vmatprep.mubr.msk.f32.mxu0 %vm2665_vm0, %v2666_v13 }
  0x85   : > { %2356 = vmatmul.mubr.f32.vlgmr.msra.gmra.mrb[8].mxu1 %v2985_v15  ;;  %2493 = vmatprep.subr.bf16.mxu0 %v2664_v3  ;;  %v227_v15 = vand.u32 7, %v222_v62 }
  0x87   : > { %vm1338_vm3 = vcmp.eq.s32.totalorder %v227_v15, 0  ;;  %vm1836_vm4 = vcmp.eq.s32.totalorder %v227_v15, 7 }
  0x88   : > { %2495 = vmatpush3.bf16.msra.mxu0 %v2901_v32 }
  0x89   : > { %2496 = vmatprep.subr.bf16.mxu0 %v2664_v3 }
  0x8c   : > { %2498 = vmatpush3.bf16.msra.mxu0 %v2915_v44 }
  0x8d   : > { %2499 = vmatprep.subr.bf16.mxu0 %v2664_v3 }
  0x90   : > { %2501 = vmatpush3.bf16.msra.mxu0 %v2927_v50 }
  0x93   : > { %2290 = vmatmul.mubr.f32.vlgmr.msra.gmra.mrb[4].mxu0 %v2817_v37 }
  0xf6   : > { %v532_v19 = vpop.f32.mrb[0].mxu0 }
  0xf7   : > { %v2120_v35 = vpop.f32.mrb[1].mxu0 }
  0xf8   : > { %v333_v26 = vpop.f32.mrb[0].mxu1 }
  0xf9   : > { %v2082_v27 = vpop.f32.mrb[1].mxu1 }
 0x106   : > { %v708_v41 = vpop.f32.mrb[2].mxu0 }
 0x107   : > { %v2158_v32 = vpop.f32.mrb[3].mxu0 }
 0x108   : > { %v444_v36 = vpop.f32.mrb[2].mxu1 }
 0x109   : > { %v445_v13 = vadd.f32 %v444_v36, %v333_v26  ;;  %v2101_v40 = vpop.f32.mrb[3].mxu1 }
 0x10b   : > { %v533_v43 = vadd.f32 %v532_v19, %v445_v13 }
 0x118   : > { %v613_v45 = vpop.f32.mrb[4].mxu1 }
 0x119   : > { %v614_v51 = vadd.f32 %v613_v45, %v533_v43  ;;  %v2139_v44 = vpop.f32.mrb[5].mxu1 }
 0x11b   : > { %v709_v52 = vadd.f32 %v708_v41, %v614_v51 }
 0x128   : > { %v787_v3 = vpop.f32.mrb[6].mxu1 }
 0x129   : > { %v788_v54 = vadd.f32 %v787_v3, %v709_v52  ;;  %v2177_v50 = vpop.f32.mrb[7].mxu1 }
 0x12b   : > { %v791_v25 = vadd.f32 %v1921_v16, %v788_v54 }
 0x158   : > { %v1831_v58 = vpop.f32.mrb[8].mxu1 }
 0x159   : > { %v2357_v37 = vpop.f32.mrb[9].mxu1  ;;  %v1835_v21 = vrot.slane %v1831_v58, 1 }
 0x15b   : > { %v1839_v24 = vsel %vm1836_vm4, 0.0, %v1835_v21 }
 0x166   : > { %v1333_v17 = vpop.f32.mrb[4].mxu0 }
 0x167   : > { %v1337_v22 = vrot.slane %v1333_v17, 7  ;;  %v2291_v23 = vpop.f32.mrb[5].mxu0 }
 0x169   : > { %v1341_v28 = vsel %vm1338_vm3, 0.0, %v1337_v22 }
 0x16a   : > { %v1342_v29 = vadd.f32 %v1341_v28, %v791_v25 }
 0x16c   : > { %v1840_v30 = vadd.f32 %v1839_v24, %v1342_v29 }
 0x16e   : > { %1841 = vst.msk [vmem:[%s215_s7] sm:$0xff] %vm1347_vm2, %v1840_v30 }
 0x16f   : > { %2613 = shalt.err (!%p2610_p3)
}
 0x170   : > { %s2614_s16 = scalar_lea.hbm %s3147_s11, 128  ;;  %s2618_s25 = scalar_lea.hbm %s3195_s5, 256 }
 0x171   : > { %p2615_p4 = scmp.ne.s32.totalorder %s3147_s11, %s2614_s16  ;;  %p2619_p9 = scmp.lt.u32.totalorder %s3147_s11, %s3195_s5 }
 0x172   : > { %p2620_p10 = scmp.lt.u32.totalorder %s2618_s25, %s2614_s16  ;;  %p2622_p12 = scmp.lt.u32.totalorder %s2614_s16, %s3147_s11 }
 0x173   : > { %p2616_p7 = pnand %p2615_p4, %p2736_p5 }
 0x174   : > { %p2621_p11 = por %p2620_p10, %p2619_p9 }
 0x175   : > { %p2617_p8 = pneg %p2616_p7 }
 0x176   : > { %p2623_p13 = por %p2622_p12, %p2621_p11 }
 0x178   : > { %p2624_p0 = pnand %p2623_p13, %p2617_p8 }
 0x17a   : > { %2627 = shalt.err (!%p2624_p0)
}
 0x17b   : > { %2558 = dma.vmem_to_hbm [thread:$0]  (%p2736_p5), %s3149_s8, 128, %s3147_s11, %s1843_s12  }
 0x17c PF: > { %p2564_p1 = scmp.ge.s32.totalorder %s2662_s21, 2  ;;  %s1868_s6 = sand.u32 1, %s2650_s18  }
 0x17d   : > { %s1869_s7 = scalar_lea.sflag [#allocation3], %s1868_s6 }
 0x17e   : > { %p2561_p2 = pnand %p2564_p1, %p2740_p6 }
 0x180   : > { %2645 = dma.done.wait (!%p2561_p2), %s1869_s7, 128  }
 0x181   : > { %2647 = vsyncadd (!%p2561_p2), %s1869_s7, 4294967168  ;;  %p15_p3 = scmp.ge.s32.totalorder %s2723_s24, 4   ;;  %s3198_s18 = smov %s2654_s19 }
 0x182   : > { %s3199_s19 = smov %s2658_s20  ;;  %s3200_s20 = smov %s2734_s27 }
 0x183   : > { %s3201_s21 = smov %s2723_s24  ;;  %17 = sbr.rel (!%p15_p3) target bundleno = 3 (0x3), region = 75 }
 0x18a   :  { %1874 = vsyncpa [#allocation3], 1 }
 0x18b   :  { %1876 = vsyncpa [#allocation3 + $0x1], 1 }

// kernel: tpu_custom_call.1
= control target key start
LH: loop header
LB: loop body
LE: loop exit
PB: predicated region body
PF: predicated region fallthrough
CT: control target
= control target key end

     0   :  { %10 = vsyncpa [#allocation3], 0  ;;  %s3190_s0 = inlined_call_operand.vmem [shape: f32[16,64], index: 0, kind: input, shape index: {}]   ;;  %s3191_s1 = inlined_call_operand.vmem [shape: f32[64,32], index: 1, kind: input, shape index: {}]   ;;  %s3192_s2 = inlined_call_operand.vmem [shape: f32[64,32], index: 2, kind: input, shape index: {}]   ;;  %s3193_s3 = inlined_call_operand.vmem [shape: f32[32,32], index: 3, kind: input, shape index: {}]   ;;  %s3194_s4 = inlined_call_operand.vmem [shape: f32[1,32], index: 4, kind: input, shape index: {}]   ;;  %s3195_s5 = inlined_call_operand.hbm [shape: f32[16,32], index: 5, kind: output, shape index: {}]  }
   0x1   :  { %12 = vsyncpa [#allocation3 + $0x1], 0  ;;  %s2698_s18 = smov 0   ;;  %s2700_s19 = smov 0  }
   0x2   :  { %s2702_s20 = smov 0   ;;  %s2704_s21 = smov 0  }
   0x3 LB: > { %s2719_s22 = sadd.s32 4294967295, %s2662_s21   ;;  %s1915_s23 = sadd.s32 4294967294, %s2662_s21   ;;  %s2662_s21 = sphi %s2704_s21, %s3201_s21   ;;  %s2658_s20 = sphi %s2702_s20, %s3200_s20   ;;  %s2654_s19 = sphi %s2700_s19, %s3199_s19   ;;  %s2650_s18 = sphi %s2698_s18, %s3198_s18  }
   0x4   : > { %s2723_s24 = sadd.s32 1, %s2662_s21   ;;  %s135_s25 = sadd.s32 1, %s2658_s20 }
   0x5   : > { %s132_s26 = ssub.s32 %s2662_s21, %s2723_s24  ;;  %p145_p0 = scmp.ne.s32.totalorder %s2658_s20, %s2654_s19 }
   0x6   : > { %p133_p1 = scmp.eq.s32.totalorder %s132_s26, 0  ;;  %p146_p2 = scmp.eq.s32.totalorder %s2719_s22, 1 }
   0x7   : > { %p151_p3 = scmp.ne.s32.totalorder %s2654_s19, %s2650_s18  ;;  %p152_p4 = scmp.eq.s32.totalorder %s1915_s23, 1 }
   0x8   : > { %s2734_s27 = scalar_select %p133_p1, %s2658_s20, %s135_s25  }
   0x9   : > { %p2736_p5 = por %p146_p2, %p145_p0  ;;  %p2740_p6 = por %p152_p4, %p151_p3 }
   0xa   : > { %p1918_p7 = scmp.ge.s32.totalorder %s2662_s21, 1  ;;  %p189_p8 = scmp.lt.s32.totalorder %s2662_s21, 3 }
   0xc   : > { %p190_p9 = pnand %p1918_p7, %p189_p8 }
   0xd   : > { %v242_v0 = vld [vmem:[%s3192_s2] sm:$0xff] (!%p190_p9)  ;;  %v243_v1 = vld [vmem:[%s3192_s2 + $0x8] sm:$0xff] (!%p190_p9)  ;;  %v244_v2 = vld [vmem:[%s3192_s2 + $0x10] sm:$0xff] (!%p190_p9)  ;;  %v2664_v3 = vmov (!%p190_p9), 0.0|0.0   ;;  %vm2665_vm0 = vmmov (!%p190_p9), 0   ;;  %v2666_v13 = vmov (!%p190_p9), 0.0  }
   0xe   : > { %193 = sbr.rel (%p190_p9) target bundleno = 380 (0x17c), region = 40  ;;  %2358 = vmatprep.subr.bf16.mxu1 (!%p190_p9), %v2664_v3  ;;  %v255_v4 = vand.u32 (!%p190_p9), 4294901760, %v242_v0  ;;  %v258_v5 = vand.u32 (!%p190_p9), 4294901760, %v243_v1  ;;  %2382 = vmatprep.subr.bf16.mxu0 (!%p190_p9), %v2664_v3  ;;  %v245_v6 = vld [vmem:[%s3192_s2 + $0x18] sm:$0xff] (!%p190_p9)  ;;  %v261_v7 = vand.u32 (!%p190_p9), 4294901760, %v244_v2  ;;  %v246_v8 = vld [vmem:[%s3192_s2 + $0x20] sm:$0xff] (!%p190_p9) }
   0xf   : > { %v247_v9 = vld [vmem:[%s3192_s2 + $0x28] sm:$0xff] (!%p190_p9)  ;;  %v264_v10 = vand.u32 (!%p190_p9), 4294901760, %v245_v6  ;;  %v267_v11 = vand.u32 (!%p190_p9), 4294901760, %v246_v8  ;;  %2080 = vmatprep.mubr.msk.f32.mxu1 (!%p190_p9), %vm2665_vm0, %v2666_v13  ;;  %p216_p10 = scmp.lt.s32.totalorder (!%p190_p9), %s2719_s22, 1  ;;  %2118 = vmatprep.mubr.msk.f32.mxu0 (!%p190_p9), %vm2665_vm0, %v2666_v13  ;;  %v248_v19 = vld [vmem:[%s3192_s2 + $0x30] sm:$0xff] (!%p190_p9)  ;;  %v249_v20 = vld [vmem:[%s3192_s2 + $0x38] sm:$0xff] (!%p190_p9) }
  0x10   : > { %v270_v12 = vand.u32 (!%p190_p9), 4294901760, %v247_v9  ;;  %v2771_v14 = vpack.c.bf16 (!%p190_p9), %v258_v5, %v255_v4  ;;  %v2773_v15 = vsub.f32 (!%p190_p9), %v242_v0, %v255_v4  ;;  %v2775_v16 = vsub.f32 (!%p190_p9), %v243_v1, %v258_v5  ;;  %s213_s23 = sand.u32 (!%p190_p9), 1, %s2654_s19  }
  0x11   : > { %v2777_v17 = vsub.f32 (!%p190_p9), %v244_v2, %v261_v7  ;;  %v2779_v18 = vsub.f32 (!%p190_p9), %v245_v6, %v264_v10  ;;  %v2793_v24 = vpack.c.bf16 (!%p190_p9), %v264_v10, %v261_v7  ;;  %v2796_v25 = vsub.f32 (!%p190_p9), %v246_v8, %v267_v11  ;;  %v792_v8 = vld [vmem:[%s3191_s1] sm:$0xff] (!%p190_p9)  ;;  %s1919_s25 = sshll.u32 (!%p190_p9), %s213_s23, 3  ;;  %s1843_s12 = scalar_lea.sflag (!%p190_p9), [#allocation3], %s213_s23 }
  0x12   : > { %2360 = vmatpush3.bf16.msra.mxu1 (!%p190_p9), %v2771_v14  ;;  %v340_v21 = vand.u32 (!%p190_p9), 4294901760, %v2773_v15  ;;  %v347_v22 = vand.u32 (!%p190_p9), 4294901760, %v2775_v16  ;;  %v2383_v23 = vpack.c.bf16 (!%p190_p9), %v2775_v16, %v2773_v15  ;;  %v2798_v26 = vsub.f32 (!%p190_p9), %v247_v9, %v270_v12  ;;  %v793_v9 = vld [vmem:[%s3191_s1 + $0x8] sm:$0xff] (!%p190_p9)  ;;  %s215_s7 = scalar_lea.vmem (!%p190_p9), [#allocation2], %s1919_s25 }
  0x13   : > { %2361 = vmatprep.subr.bf16.mxu1 (!%p190_p9), %v2664_v3  ;;  %vm250_vm1 = vcmask (!%p190_p9), 523264   ;;  %v2386_v27 = vpack.c.bf16 (!%p190_p9), %v2779_v18, %v2777_v17  ;;  %v273_v28 = vand.u32 (!%p190_p9), 4294901760, %v248_v19  ;;  %v276_v29 = vand.u32 (!%p190_p9), 4294901760, %v249_v20  ;;  %s1856_s8 = sshll.u32 (!%p190_p9), %s215_s7, 4  ;;  %s3149_s8 = int_to_ptr.vmem [resolvable:$true] %s1856_s8 }
  0x14   : > { %2384 = vmatpush3.bf16.msra.mxu0 (!%p190_p9), %v2383_v23  ;;  %v341_v30 = vsub.f32 (!%p190_p9), %v2773_v15, %v340_v21  ;;  %v348_v32 = vsub.f32 (!%p190_p9), %v2775_v16, %v347_v22  ;;  %v354_v33 = vand.u32 (!%p190_p9), 4294901760, %v2777_v17  ;;  %v2812_v34 = vpack.c.bf16 (!%p190_p9), %v270_v12, %v267_v11  ;;  %v794_v16 = vld [vmem:[%s3191_s1 + $0x10] sm:$0xff] (!%p190_p9)  ;;  %v796_v23 = vld [vmem:[%s3191_s1 + $0x20] sm:$0xff] (!%p190_p9)  ;;  %s2600_s13 = scalar_lea.vmem (!%p190_p9), %s3149_s8, 128 }
  0x15   : > { %s217_s30 = scalar_select %p216_p10, %s2719_s22, 1  ;;  %2385 = vmatprep.subr.bf16.mxu0 %v2664_v3  ;;  %v361_v36 = vand.u32 4294901760, %v2779_v18  ;;  %v2389_v38 = vpack.c.bf16 %v2798_v26, %v2796_v25  ;;  %v381_v39 = vsub.f32 %v248_v19, %v273_v28  ;;  %v388_v40 = vsub.f32 %v249_v20, %v276_v29 }
  0x16   : > { %2363 = vmatpush3.bf16.msra.mxu1 %v2793_v24  ;;  %v342_v41 = vand.u32 4294901760, %v341_v30  ;;  %v349_v43 = vand.u32 4294901760, %v348_v32  ;;  %v355_v44 = vsub.f32 %v2777_v17, %v354_v33  ;;  %v368_v45 = vand.u32 4294901760, %v2796_v25  ;;  %v795_v17 = vld [vmem:[%s3191_s1 + $0x18] sm:$0xff]  ;;  %p2601_p11 = scmp.ne.s32.totalorder %s3149_s8, %s2600_s13 }
  0x17   : > { %s1920_s6 = sshll.u32 %s217_s30, 3  ;;  %2364 = vmatprep.subr.bf16.mxu1 %v2664_v3  ;;  %v2828_v46 = vpack.c.bf16 %v276_v29, %v273_v28  ;;  %v362_v47 = vsub.f32 %v2779_v18, %v361_v36  ;;  %v375_v48 = vand.u32 4294901760, %v2798_v26  ;;  %v2392_v50 = vpack.c.bf16 %v388_v40, %v381_v39  ;;  %v798_v29 = vld [vmem:[%s3191_s1 + $0x30] sm:$0xff]  ;;  %v799_v30 = vld [vmem:[%s3191_s1 + $0x38] sm:$0xff] }
  0x18   : > { %s219_s9 = scalar_lea.vmem %s3190_s0, %s1920_s6  ;;  %2387 = vmatpush3.bf16.msra.mxu0 %v2386_v27  ;;  %v2371_v52 = vpack.c.bf16 %v349_v43, %v342_v41  ;;  %v356_v53 = vand.u32 4294901760, %v355_v44  ;;  %v369_v54 = vsub.f32 %v2796_v25, %v368_v45  ;;  %v382_v57 = vand.u32 4294901760, %v381_v39  ;;  %v797_v25 = vld [vmem:[%s3191_s1 + $0x28] sm:$0xff]  ;;  %s1923_s6 = sshll.u32 %s2719_s22, 7 }
  0x19   : > { %v2807_v31 = vld [vmem:[%s219_s9] sm:$0xff]  ;;  %2388 = vmatprep.subr.bf16.mxu0 %v2664_v3  ;;  %v363_v55 = vand.u32 4294901760, %v362_v47  ;;  %v376_v56 = vsub.f32 %v2798_v26, %v375_v48  ;;  %v389_v58 = vand.u32 4294901760, %v388_v40  ;;  %v2407_v60 = vpack.c.bf16 %v347_v22, %v340_v21  ;;  %s3147_s11 = scalar_lea.hbm %s3195_s5, %s1923_s6  ;;  %p2602_p12 = pnand %p2601_p11, %p2736_p5 }
  0x1a   : > { %v252_v35 = vsel %vm250_vm1, %v2807_v31, 0  ;;  %2366 = vmatpush3.bf16.msra.mxu1 %v2812_v34  ;;  %v370_v61 = vand.u32 4294901760, %v369_v54  ;;  %v383_v0 = vsub.f32 %v381_v39, %v382_v57  ;;  %v2410_v2 = vpack.c.bf16 %v361_v36, %v354_v33  ;;  %s2667_s22 = smov [#allocation2]  }
  0x1b   : > { %v2817_v37 = vand.u32 4294901760, %v252_v35  ;;  %2367 = vmatprep.subr.bf16.mxu1 %v2664_v3  ;;  %v2374_v62 = vpack.c.bf16 %v363_v55, %v356_v53  ;;  %v377_v63 = vand.u32 4294901760, %v376_v56  ;;  %v390_v1 = vsub.f32 %v388_v40, %v389_v58  ;;  %p2603_p13 = pneg %p2602_p12  ;;  %s2604_s14 = sshll.u32 %s2667_s22, 4  ;;  %s2605_s14 = int_to_ptr.vmem [resolvable:$false] %s2604_s14 }
  0x1c   : > { %2390 = vmatpush3.bf16.msra.mxu0 %v2389_v38  ;;  %v384_v5 = vand.u32 4294901760, %v383_v0  ;;  %v2413_v7 = vpack.c.bf16 %v375_v48, %v368_v45  ;;  %v2416_v11 = vpack.c.bf16 %v389_v58, %v382_v57  ;;  %v801_v12 = vand.u32 4294901760, %v792_v8  ;;  %v1344_v0 = vld [vmem:[%s3193_s3 + $0x8] sm:$0xff]  ;;  %s2606_s15 = scalar_lea.vmem %s2605_s14, 256  ;;  %p2607_p0 = scmp.lt.s32.totalorder %s3149_s8, %s2605_s14 }
  0x1d   : > { %v2823_v42 = vsub.f32 %v252_v35, %v2817_v37  ;;  %2391 = vmatprep.subr.bf16.mxu0 %v2664_v3  ;;  %v2377_v4 = vpack.c.bf16 %v377_v63, %v370_v61  ;;  %v391_v6 = vand.u32 4294901760, %v390_v1  ;;  %v804_v15 = vand.u32 4294901760, %v793_v9  ;;  %v1343_v63 = vld [vmem:[%s3193_s3] sm:$0xff]  ;;  %p2608_p1 = scmp.lt.s32.totalorder %s2606_s15, %s2600_s13 }
  0x1e   : > { %2369 = vmatpush3.bf16.msra.mxu1 %v2828_v46  ;;  %v2871_v18 = vsub.f32 %v792_v8, %v801_v12  ;;  %v807_v21 = vand.u32 4294901760, %v794_v16  ;;  %v810_v22 = vand.u32 4294901760, %v795_v17  ;;  %v813_v28 = vand.u32 4294901760, %v796_v23 }
  0x1f   : > { %v2834_v49 = vand.u32 4294901760, %v2823_v42  ;;  %2370 = vmatprep.subr.bf16.mxu1 %v2664_v3  ;;  %v2380_v10 = vpack.c.bf16 %v391_v6, %v384_v5  ;;  %v2873_v19 = vpack.c.bf16 %v804_v15, %v801_v12  ;;  %v2875_v20 = vsub.f32 %v793_v9, %v804_v15  ;;  %p2609_p2 = por %p2608_p1, %p2607_p0 }
  0x20   : > { %2393 = vmatpush3.bf16.msra.mxu0 %v2392_v50  ;;  %v2890_v26 = vsub.f32 %v794_v16, %v807_v21  ;;  %v2892_v27 = vsub.f32 %v795_v17, %v810_v22  ;;  %v2901_v32 = vpack.c.bf16 %v810_v22, %v807_v21  ;;  %v816_v33 = vand.u32 4294901760, %v797_v25 }
  0x21   : > { %v330_v51 = vsub.f32 %v2823_v42, %v2834_v49  ;;  %2406 = vmatprep.subr.bf16.mxu0 %v2664_v3  ;;  %v886_v35 = vand.u32 4294901760, %v2871_v18  ;;  %v893_v36 = vand.u32 4294901760, %v2875_v20  ;;  %v819_v38 = vand.u32 4294901760, %v798_v29  ;;  %p2610_p3 = pnand %p2609_p2, %p2603_p13 }
  0x22   : > { %v822_v39 = vand.u32 4294901760, %v799_v30  ;;  %v2910_v40 = vsub.f32 %v796_v23, %v813_v28  ;;  %v900_v41 = vand.u32 4294901760, %v2890_v26  ;;  %v907_v43 = vand.u32 4294901760, %v2892_v27 }
  0x23   : > { %v2843_v59 = vand.u32 4294901760, %v330_v51  ;;  %2119 = vmatmul.mubr.f32.vlgmr.msra.gmra.mrb[0].mxu0 %v2823_v42  ;;  %v2915_v44 = vpack.c.bf16 %v816_v33, %v813_v28  ;;  %v2917_v45 = vsub.f32 %v797_v25, %v816_v33  ;;  %v887_v47 = vsub.f32 %v2871_v18, %v886_v35 }
  0x24   : > { %2408 = vmatpush3.bf16.msra.mxu0 %v2407_v60  ;;  %2156 = vmatprep.mubr.msk.f32.mxu0 %vm2665_vm0, %v2666_v13  ;;  %v894_v48 = vsub.f32 %v2875_v20, %v893_v36  ;;  %v2927_v50 = vpack.c.bf16 %v822_v39, %v819_v38  ;;  %v2930_v51 = vsub.f32 %v798_v29, %v819_v38  ;;  %v914_v54 = vand.u32 4294901760, %v2910_v40 }
  0x25   : > { %2081 = vmatmul.mubr.f32.vlgmr.msra.gmra.mrb[0].mxu1 %v2843_v59  ;;  %2409 = vmatprep.subr.bf16.mxu0 %v2664_v3  ;;  %v901_v53 = vsub.f32 %v2890_v26, %v900_v41  ;;  %v888_v55 = vand.u32 4294901760, %v887_v47  ;;  %v908_v57 = vsub.f32 %v2892_v27, %v907_v43  ;;  %v921_v58 = vand.u32 4294901760, %v2917_v45 }
  0x26   : > { %2372 = vmatpush3.bf16.msra.mxu1 %v2371_v52  ;;  %2099 = vmatprep.mubr.msk.f32.mxu1 %vm2665_vm0, %v2666_v13  ;;  %v2932_v52 = vsub.f32 %v799_v30, %v822_v39  ;;  %v895_v56 = vand.u32 4294901760, %v894_v48  ;;  %v915_v60 = vsub.f32 %v2910_v40, %v914_v54  ;;  %v928_v61 = vand.u32 4294901760, %v2930_v51 }
  0x27   : > { %2373 = vmatprep.subr.bf16.mxu1 %v2664_v3  ;;  %vm1347_vm2 = vcmask 261120   ;;  %v922_v5 = vsub.f32 %v2917_v45, %v921_v58  ;;  %v1351_v6 = vand.u32 4294901760, %v1343_v63 }
  0x28   : > { %2411 = vmatpush3.bf16.msra.mxu0 %v2410_v2  ;;  %v2443_v1 = vpack.c.bf16 %v895_v56, %v888_v55  ;;  %v902_v2 = vand.u32 4294901760, %v901_v53  ;;  %v1348_v8 = vsel %vm1347_vm2, %v2807_v31, 0  ;;  %v916_v9 = vand.u32 4294901760, %v915_v60 }
  0x29   : > { %2412 = vmatprep.subr.bf16.mxu0 %v2664_v3  ;;  %v923_v12 = vand.u32 4294901760, %v922_v5  ;;  %v929_v31 = vsub.f32 %v2930_v51, %v928_v61  ;;  %v2985_v15 = vand.u32 4294901760, %v1348_v8  ;;  %v2988_v16 = vsub.f32 %v1343_v63, %v1351_v6 }
  0x2a   : > { %2375 = vmatpush3.bf16.msra.mxu1 %v2374_v62  ;;  %v935_v62 = vand.u32 4294901760, %v2932_v52 }
  0x2b   : > { %2376 = vmatprep.subr.bf16.mxu1 %v2664_v3  ;;  %v2449_v23 = vpack.c.bf16 %v923_v12, %v916_v9  ;;  %v930_v25 = vand.u32 4294901760, %v929_v31  ;;  %v2995_v29 = vsub.f32 %v1348_v8, %v2985_v15  ;;  %v1432_v33 = vand.u32 4294901760, %v2988_v16 }
  0x2c   : > { %2414 = vmatpush3.bf16.msra.mxu0 %v2413_v7  ;;  %v1354_v7 = vand.u32 4294901760, %v1344_v0  ;;  %v2461_v9 = vpack.c.bf16 %v2917_v45, %v2910_v40  ;;  %v2479_v31 = vpack.c.bf16 %v893_v36, %v886_v35 }
  0x2d   : > { %2415 = vmatprep.subr.bf16.mxu0 %v2664_v3  ;;  %v1421_v48 = vand.u32 4294901760, %v2995_v29 }
  0x2e   : > { %2378 = vmatpush3.bf16.msra.mxu1 %v2377_v4  ;;  %v909_v4 = vand.u32 4294901760, %v908_v57  ;;  %v2990_v17 = vsub.f32 %v1344_v0, %v1354_v7  ;;  %v3006_v47 = vpack.c.bf16 %v1354_v7, %v1351_v6  ;;  %v2455_v57 = vpack.c.bf16 %v2875_v20, %v2871_v18 }
  0x2f   : > { %2379 = vmatprep.subr.bf16.mxu1 %v2664_v3  ;;  %v1422_v60 = vsub.f32 %v2995_v29, %v1421_v48  ;;  %v2482_v18 = vpack.c.bf16 %v907_v43, %v900_v41  ;;  %v2488_v20 = vpack.c.bf16 %v935_v62, %v928_v61  ;;  %v221_v61 = vlaneseq }
  0x30   : > { %2417 = vmatpush3.bf16.msra.mxu0 %v2416_v11  ;;  %v2446_v11 = vpack.c.bf16 %v909_v4, %v902_v2  ;;  %v1439_v38 = vand.u32 4294901760, %v2990_v17  ;;  %v2458_v4 = vpack.c.bf16 %v2892_v27, %v2890_v26 }
  0x31   : > { %2430 = vmatprep.subr.bf16.mxu0 %v2664_v3  ;;  %v1423_v5 = vand.u32 4294901760, %v1422_v60 }
  0x32   : > { %2381 = vmatpush3.bf16.msra.mxu1 %v2380_v10  ;;  %v1345_v10 = vld [vmem:[%s3193_s3 + $0x10] sm:$0xff]  ;;  %v1440_v53 = vsub.f32 %v2990_v17, %v1439_v38 }
  0x33   : > { %2394 = vmatprep.subr.bf16.mxu1 %v2664_v3  ;;  %2157 = vmatmul.mubr.f32.vlgmr.msra.gmra.mrb[2].mxu0 %v2817_v37  ;;  %v1357_v21 = vand.u32 4294901760, %v1345_v10 }
  0x34   : > { %2432 = vmatpush3.bf16.msra.mxu0 %v2873_v19  ;;  %2194 = vmatprep.mubr.msk.f32.mxu0 %vm2665_vm0, %v2666_v13  ;;  %v1441_v0 = vand.u32 4294901760, %v1440_v53 }
  0x35   : > { %2100 = vmatmul.mubr.f32.vlgmr.msra.gmra.mrb[2].mxu1 %v2817_v37  ;;  %2433 = vmatprep.subr.bf16.mxu0 %v2664_v3 }
  0x36   : > { %2396 = vmatpush3.bf16.msra.mxu1 %v2771_v14  ;;  %2137 = vmatprep.mubr.msk.f32.mxu1 %vm2665_vm0, %v2666_v13 }
  0x37   : > { %2397 = vmatprep.subr.bf16.mxu1 %v2664_v3 }
  0x38   : > { %2435 = vmatpush3.bf16.msra.mxu0 %v2901_v32 }
  0x39   : > { %2436 = vmatprep.subr.bf16.mxu0 %v2664_v3 }
  0x3a   : > { %2399 = vmatpush3.bf16.msra.mxu1 %v2793_v24 }
  0x3b   : > { %2400 = vmatprep.subr.bf16.mxu1 %v2664_v3 }
  0x3c   : > { %2438 = vmatpush3.bf16.msra.mxu0 %v2915_v44 }
  0x3d   : > { %2439 = vmatprep.subr.bf16.mxu0 %v2664_v3 }
  0x3e   : > { %2402 = vmatpush3.bf16.msra.mxu1 %v2812_v34 }
  0x3f   : > { %2403 = vmatprep.subr.bf16.mxu1 %v2664_v3 }
  0x40   : > { %2441 = vmatpush3.bf16.msra.mxu0 %v2927_v50 }
  0x41   : > { %2442 = vmatprep.subr.bf16.mxu0 %v2664_v3 }
  0x42   : > { %2405 = vmatpush3.bf16.msra.mxu1 %v2828_v46 }
  0x43   : > { %2418 = vmatprep.subr.bf16.mxu1 %v2664_v3  ;;  %2195 = vmatmul.mubr.f32.vlgmr.msra.gmra.mrb[4].mxu0 %v2843_v59  ;;  %v936_v59 = vsub.f32 %v2932_v52, %v935_v62  ;;  %v222_v62 = vshrl.u32 %v221_v61, 7 }
  0x44   : > { %2444 = vmatpush3.bf16.msra.mxu0 %v2443_v1  ;;  %2213 = vmatprep.mubr.msk.f32.mxu0 %vm2665_vm0, %v2666_v13 }
  0x45   : > { %2138 = vmatmul.mubr.f32.vlgmr.msra.gmra.mrb[4].mxu1 %v2834_v49  ;;  %2445 = vmatprep.subr.bf16.mxu0 %v2664_v3  ;;  %v937_v28 = vand.u32 4294901760, %v936_v59 }
  0x46   : > { %2420 = vmatpush3.bf16.msra.mxu1 %v2771_v14  ;;  %2175 = vmatprep.mubr.msk.f32.mxu1 %vm2665_vm0, %v2666_v13  ;;  %v1346_v14 = vld [vmem:[%s3193_s3 + $0x18] sm:$0xff] }
  0x47   : > { %2421 = vmatprep.subr.bf16.mxu1 %v2664_v3  ;;  %v1360_v22 = vand.u32 4294901760, %v1346_v14  ;;  %v2452_v39 = vpack.c.bf16 %v937_v28, %v930_v25 }
  0x48   : > { %2447 = vmatpush3.bf16.msra.mxu0 %v2446_v11  ;;  %v2515_v11 = vpack.c.bf16 %v2990_v17, %v2988_v16 }
  0x49   : > { %2448 = vmatprep.subr.bf16.mxu0 %v2664_v3  ;;  %v3000_v30 = vsub.f32 %v1346_v14, %v1360_v22  ;;  %v2464_v14 = vpack.c.bf16 %v2932_v52, %v2930_v51 }
  0x4a   : > { %2423 = vmatpush3.bf16.msra.mxu1 %v2793_v24  ;;  %v2998_v24 = vsub.f32 %v1345_v10, %v1357_v21 }
  0x4b   : > { %2424 = vmatprep.subr.bf16.mxu1 %v2664_v3  ;;  %v1453_v56 = vand.u32 4294901760, %v3000_v30 }
  0x4c   : > { %2450 = vmatpush3.bf16.msra.mxu0 %v2449_v23  ;;  %v1446_v55 = vand.u32 4294901760, %v2998_v24  ;;  %v2518_v12 = vpack.c.bf16 %v3000_v30, %v2998_v24 }
  0x4d   : > { %2451 = vmatprep.subr.bf16.mxu0 %v2664_v3  ;;  %v1454_v2 = vsub.f32 %v3000_v30, %v1453_v56 }
  0x4e   : > { %2426 = vmatpush3.bf16.msra.mxu1 %v2812_v34  ;;  %v1433_v34 = vsub.f32 %v2988_v16, %v1432_v33  ;;  %v1447_v1 = vsub.f32 %v2998_v24, %v1446_v55  ;;  %v2530_v59 = vpack.c.bf16 %v1453_v56, %v1446_v55  ;;  %v1921_v16 = vld [vmem:[%s3194_s4] ss:$0 sm:$0xff] }
  0x4f   : > { %2427 = vmatprep.subr.bf16.mxu1 %v2664_v3  ;;  %v1455_v8 = vand.u32 4294901760, %v1454_v2 }
  0x50   : > { %2453 = vmatpush3.bf16.msra.mxu0 %v2452_v39  ;;  %v1434_v63 = vand.u32 4294901760, %v1433_v34  ;;  %v1448_v7 = vand.u32 4294901760, %v1447_v1 }
  0x51   : > { %2454 = vmatprep.subr.bf16.mxu0 %v2664_v3 }
  0x52   : > { %2429 = vmatpush3.bf16.msra.mxu1 %v2828_v46  ;;  %v3023_v46 = vpack.c.bf16 %v1360_v22, %v1357_v21  ;;  %v2509_v6 = vpack.c.bf16 %v1441_v0, %v1434_v63  ;;  %v2512_v10 = vpack.c.bf16 %v1455_v8, %v1448_v7 }
  0x53   : > { %2502 = vmatprep.subr.bf16.mxu1 %v2664_v3  ;;  %2214 = vmatmul.mubr.f32.vlgmr.msra.gmra.mrb[4].mxu0 %v2817_v37 }
  0x54   : > { %2456 = vmatpush3.bf16.msra.mxu0 %v2455_v57  ;;  %2232 = vmatprep.mubr.msk.f32.mxu0 %vm2665_vm0, %v2666_v13 }
  0x55   : > { %2176 = vmatmul.mubr.f32.vlgmr.msra.gmra.mrb[6].mxu1 %v2817_v37  ;;  %2457 = vmatprep.subr.bf16.mxu0 %v2664_v3 }
  0x56   : > { %2504 = vmatpush3.bf16.msra.mxu1 %v3006_v47  ;;  %2300 = vmatprep.mubr.msk.f32.mxu1 %vm2665_vm0, %v2666_v13 }
  0x57   : > { %2505 = vmatprep.subr.bf16.mxu1 %v2664_v3 }
  0x58   : > { %2459 = vmatpush3.bf16.msra.mxu0 %v2458_v4 }
  0x59   : > { %2460 = vmatprep.subr.bf16.mxu0 %v2664_v3 }
  0x5a   : > { %2507 = vmatpush3.bf16.msra.mxu1 %v3023_v46 }
  0x5b   : > { %2508 = vmatprep.subr.bf16.mxu1 %v2664_v3 }
  0x5c   : > { %2462 = vmatpush3.bf16.msra.mxu0 %v2461_v9 }
  0x5d   : > { %2301 = vmatmul.mubr.f32.vlgmr.msra.gmra.mrb[8].mxu1 %v1423_v5  ;;  %2463 = vmatprep.subr.bf16.mxu0 %v2664_v3 }
  0x5e   : > { %2510 = vmatpush3.bf16.msra.mxu1 %v2509_v6  ;;  %2311 = vmatprep.mubr.msk.f32.mxu1 %vm2665_vm0, %v2666_v13 }
  0x5f   : > { %2511 = vmatprep.subr.bf16.mxu1 %v2664_v3 }
  0x60   : > { %2465 = vmatpush3.bf16.msra.mxu0 %v2464_v14 }
  0x61   : > { %2466 = vmatprep.subr.bf16.mxu0 %v2664_v3 }
  0x62   : > { %2513 = vmatpush3.bf16.msra.mxu1 %v2512_v10 }
  0x63   : > { %2514 = vmatprep.subr.bf16.mxu1 %v2664_v3  ;;  %2233 = vmatmul.mubr.f32.vlgmr.msra.gmra.mrb[4].mxu0 %v2823_v42  ;;  %v2527_v42 = vpack.c.bf16 %v1439_v38, %v1432_v33 }
  0x64   : > { %2468 = vmatpush3.bf16.msra.mxu0 %v2873_v19  ;;  %2251 = vmatprep.mubr.msk.f32.mxu0 %vm2665_vm0, %v2666_v13 }
  0x65   : > { %2312 = vmatmul.mubr.f32.vlgmr.msra.gmra.mrb[8].mxu1 %v2985_v15  ;;  %2469 = vmatprep.subr.bf16.mxu0 %v2664_v3 }
  0x66   : > { %2516 = vmatpush3.bf16.msra.mxu1 %v2515_v11  ;;  %2322 = vmatprep.mubr.msk.f32.mxu1 %vm2665_vm0, %v2666_v13 }
  0x67   : > { %2517 = vmatprep.subr.bf16.mxu1 %v2664_v3 }
  0x68   : > { %2471 = vmatpush3.bf16.msra.mxu0 %v2901_v32 }
  0x69   : > { %2472 = vmatprep.subr.bf16.mxu0 %v2664_v3 }
  0x6a   : > { %2519 = vmatpush3.bf16.msra.mxu1 %v2518_v12 }
  0x6b   : > { %2520 = vmatprep.subr.bf16.mxu1 %v2664_v3 }
  0x6c   : > { %2474 = vmatpush3.bf16.msra.mxu0 %v2915_v44 }
  0x6d   : > { %2323 = vmatmul.mubr.f32.vlgmr.msra.gmra.mrb[8].mxu1 %v2995_v29  ;;  %2475 = vmatprep.subr.bf16.mxu0 %v2664_v3 }
  0x6e   : > { %2522 = vmatpush3.bf16.msra.mxu1 %v3006_v47  ;;  %2333 = vmatprep.mubr.msk.f32.mxu1 %vm2665_vm0, %v2666_v13 }
  0x6f   : > { %2523 = vmatprep.subr.bf16.mxu1 %v2664_v3 }
  0x70   : > { %2477 = vmatpush3.bf16.msra.mxu0 %v2927_v50 }
  0x71   : > { %2478 = vmatprep.subr.bf16.mxu0 %v2664_v3 }
  0x72   : > { %2525 = vmatpush3.bf16.msra.mxu1 %v3023_v46 }
  0x73   : > { %2526 = vmatprep.subr.bf16.mxu1 %v2664_v3  ;;  %2252 = vmatmul.mubr.f32.vlgmr.msra.gmra.mrb[4].mxu0 %v2834_v49  ;;  %v2485_v49 = vpack.c.bf16 %v921_v58, %v914_v54 }
  0x74   : > { %2480 = vmatpush3.bf16.msra.mxu0 %v2479_v31  ;;  %2270 = vmatprep.mubr.msk.f32.mxu0 %vm2665_vm0, %v2666_v13 }
  0x75   : > { %2334 = vmatmul.mubr.f32.vlgmr.msra.gmra.mrb[8].mxu1 %v1421_v48  ;;  %2481 = vmatprep.subr.bf16.mxu0 %v2664_v3 }
  0x76   : > { %2528 = vmatpush3.bf16.msra.mxu1 %v2527_v42  ;;  %2344 = vmatprep.mubr.msk.f32.mxu1 %vm2665_vm0, %v2666_v13 }
  0x77   : > { %2529 = vmatprep.subr.bf16.mxu1 %v2664_v3 }
  0x78   : > { %2483 = vmatpush3.bf16.msra.mxu0 %v2482_v18 }
  0x79   : > { %2484 = vmatprep.subr.bf16.mxu0 %v2664_v3 }
  0x7a   : > { %2531 = vmatpush3.bf16.msra.mxu1 %v2530_v59 }
  0x7b   : > { %2532 = vmatprep.subr.bf16.mxu1 %v2664_v3 }
  0x7c   : > { %2486 = vmatpush3.bf16.msra.mxu0 %v2485_v49 }
  0x7d   : > { %2345 = vmatmul.mubr.f32.vlgmr.msra.gmra.mrb[8].mxu1 %v2985_v15  ;;  %2487 = vmatprep.subr.bf16.mxu0 %v2664_v3 }
  0x7e   : > { %2534 = vmatpush3.bf16.msra.mxu1 %v3006_v47  ;;  %2355 = vmatprep.mubr.msk.f32.mxu1 %vm2665_vm0, %v2666_v13 }
  0x7f   : > { %2535 = vmatprep.subr.bf16.mxu1 %v2664_v3 }
  0x80   : > { %2489 = vmatpush3.bf16.msra.mxu0 %v2488_v20 }
  0x81   : > { %2490 = vmatprep.subr.bf16.mxu0 %v2664_v3 }
  0x82   : > { %2537 = vmatpush3.bf16.msra.mxu1 %v3023_v46 }
  0x83   : > { %2271 = vmatmul.mubr.f32.vlgmr.msra.gmra.mrb[4].mxu0 %v2817_v37 }
  0x84   : > { %2492 = vmatpush3.bf16.msra.mxu0 %v2873_v19  ;;  %2289 = vmatprep.mubr.msk.f32.mxu0 %vm2665_vm0, %v2666_v13 }
  0x85   : > { %2356 = vmatmul.mubr.f32.vlgmr.msra.gmra.mrb[8].mxu1 %v2985_v15  ;;  %2493 = vmatprep.subr.bf16.mxu0 %v2664_v3  ;;  %v227_v15 = vand.u32 7, %v222_v62 }
  0x87   : > { %vm1338_vm3 = vcmp.eq.s32.totalorder %v227_v15, 0  ;;  %vm1836_vm4 = vcmp.eq.s32.totalorder %v227_v15, 7 }
  0x88   : > { %2495 = vmatpush3.bf16.msra.mxu0 %v2901_v32 }
  0x89   : > { %2496 = vmatprep.subr.bf16.mxu0 %v2664_v3 }
  0x8c   : > { %2498 = vmatpush3.bf16.msra.mxu0 %v2915_v44 }
  0x8d   : > { %2499 = vmatprep.subr.bf16.mxu0 %v2664_v3 }
  0x90   : > { %2501 = vmatpush3.bf16.msra.mxu0 %v2927_v50 }
  0x93   : > { %2290 = vmatmul.mubr.f32.vlgmr.msra.gmra.mrb[4].mxu0 %v2817_v37 }
  0xf6   : > { %v532_v19 = vpop.f32.mrb[0].mxu0 }
  0xf7   : > { %v2120_v35 = vpop.f32.mrb[1].mxu0 }
  0xf8   : > { %v333_v26 = vpop.f32.mrb[0].mxu1 }
  0xf9   : > { %v2082_v27 = vpop.f32.mrb[1].mxu1 }
 0x106   : > { %v708_v41 = vpop.f32.mrb[2].mxu0 }
 0x107   : > { %v2158_v32 = vpop.f32.mrb[3].mxu0 }
 0x108   : > { %v444_v36 = vpop.f32.mrb[2].mxu1 }
 0x109   : > { %v445_v13 = vadd.f32 %v444_v36, %v333_v26  ;;  %v2101_v40 = vpop.f32.mrb[3].mxu1 }
 0x10b   : > { %v533_v43 = vadd.f32 %v532_v19, %v445_v13 }
 0x118   : > { %v613_v45 = vpop.f32.mrb[4].mxu1 }
 0x119   : > { %v614_v51 = vadd.f32 %v613_v45, %v533_v43  ;;  %v2139_v44 = vpop.f32.mrb[5].mxu1 }
 0x11b   : > { %v709_v52 = vadd.f32 %v708_v41, %v614_v51 }
 0x128   : > { %v787_v3 = vpop.f32.mrb[6].mxu1 }
 0x129   : > { %v788_v54 = vadd.f32 %v787_v3, %v709_v52  ;;  %v2177_v50 = vpop.f32.mrb[7].mxu1 }
 0x12b   : > { %v791_v25 = vadd.f32 %v1921_v16, %v788_v54 }
 0x158   : > { %v1831_v58 = vpop.f32.mrb[8].mxu1 }
 0x159   : > { %v2357_v37 = vpop.f32.mrb[9].mxu1  ;;  %v1835_v21 = vrot.slane %v1831_v58, 1 }
 0x15b   : > { %v1839_v24 = vsel %vm1836_vm4, 0.0, %v1835_v21 }
 0x166   : > { %v1333_v17 = vpop.f32.mrb[4].mxu0 }
 0x167   : > { %v1337_v22 = vrot.slane %v1333_v17, 7  ;;  %v2291_v23 = vpop.f32.mrb[5].mxu0 }
 0x169   : > { %v1341_v28 = vsel %vm1338_vm3, 0.0, %v1337_v22 }
 0x16a   : > { %v1342_v29 = vadd.f32 %v1341_v28, %v791_v25 }
 0x16c   : > { %v1840_v30 = vadd.f32 %v1839_v24, %v1342_v29 }
 0x16e   : > { %1841 = vst.msk [vmem:[%s215_s7] sm:$0xff] %vm1347_vm2, %v1840_v30 }
 0x16f   : > { %2613 = shalt.err (!%p2610_p3)
}
 0x170   : > { %s2614_s16 = scalar_lea.hbm %s3147_s11, 128  ;;  %s2618_s25 = scalar_lea.hbm %s3195_s5, 256 }
 0x171   : > { %p2615_p4 = scmp.ne.s32.totalorder %s3147_s11, %s2614_s16  ;;  %p2619_p9 = scmp.lt.u32.totalorder %s3147_s11, %s3195_s5 }
 0x172   : > { %p2620_p10 = scmp.lt.u32.totalorder %s2618_s25, %s2614_s16  ;;  %p2622_p12 = scmp.lt.u32.totalorder %s2614_s16, %s3147_s11 }
 0x173   : > { %p2616_p7 = pnand %p2615_p4, %p2736_p5 }
 0x174   : > { %p2621_p11 = por %p2620_p10, %p2619_p9 }
 0x175   : > { %p2617_p8 = pneg %p2616_p7 }
 0x176   : > { %p2623_p13 = por %p2622_p12, %p2621_p11 }
 0x178   : > { %p2624_p0 = pnand %p2623_p13, %p2617_p8 }
 0x17a   : > { %2627 = shalt.err (!%p2624_p0)
}
 0x17b   : > { %2558 = dma.vmem_to_hbm [thread:$0]  (%p2736_p5), %s3149_s8, 128, %s3147_s11, %s1843_s12  }
 0x17c PF: > { %p2564_p1 = scmp.ge.s32.totalorder %s2662_s21, 2  ;;  %s1868_s6 = sand.u32 1, %s2650_s18  }
 0x17d   : > { %s1869_s7 = scalar_lea.sflag [#allocation3], %s1868_s6 }
 0x17e   : > { %p2561_p2 = pnand %p2564_p1, %p2740_p6 }
 0x180   : > { %2645 = dma.done.wait (!%p2561_p2), %s1869_s7, 128  }
 0x181   : > { %2647 = vsyncadd (!%p2561_p2), %s1869_s7, 4294967168  ;;  %p15_p3 = scmp.ge.s32.totalorder %s2723_s24, 4   ;;  %s3198_s18 = smov %s2654_s19 }
 0x182   : > { %s3199_s19 = smov %s2658_s20  ;;  %s3200_s20 = smov %s2734_s27 }
 0x183   : > { %s3201_s21 = smov %s2723_s24  ;;  %17 = sbr.rel (!%p15_p3) target bundleno = 3 (0x3), region = 75 }
 0x18a   :  { %1874 = vsyncpa [#allocation3], 1 }
 0x18b   :  { %1876 = vsyncpa [#allocation3 + $0x1], 1 }

</bundles_post_ra>
